<compile_context>
chip_gen: v7x
topology: tpu7x:2x2x1
jax: 0.10.0
libtpu: 0.0.40
codegen_flags: <defaults>
</compile_context>

<pallas_src>
import functools

import jax
import jax.numpy as jnp
from jax.experimental import pallas as pl
from jax.experimental.pallas import tpu as pltpu

LAYER_DIMS = [3, 128, 256, 512, 256, 128, 3]   # fixed by the PyTorch module
NEG_SLOPE = 0.01                               # F.leaky_relu default
MAXD = max(LAYER_DIMS[1:])                     # 512: pad width of merged gate/bias operand
MAX_TILE_N = 1024                              # rows per grid step (multiple of 8)


def _round_up(x, m):
    return ((x + m - 1) // m) * m


# ----------------------------------------------------------------------------- kernel
def _make_kernel(dims, residual):
    num_layers = len(dims) - 1

    def kernel(x_ref, *refs):
        # refs = (W_0 .. W_{L-1}, gate_bias, out)
        out_ref = refs[-1]
        w_refs = refs[:num_layers]
        gb_ref = refs[num_layers]

        x = x_ref[0]                                   # (tile_n, 3) f32
        h = x
        for i in range(num_layers):
            dout = dims[i + 1]
            w = w_refs[i][...]                         # (din, dout) bf16
            layer_gb = gb_ref[0, i]                    # (2, MAXD) f32
            gate = layer_gb[0:1, :dout]                # (1, dout)
            ebias = layer_gb[1:2, :dout]               # (1, dout) = b*gate + hyper_bias
            # bf16 inputs to the MXU, f32 accumulation.
            h = jnp.dot(h.astype(jnp.bfloat16), w,
                        preferred_element_type=jnp.float32)   # (tile_n, dout) f32
            h = h * gate + ebias                       # f32 elementwise (VPU)
            if i < num_layers - 1:
                h = jnp.where(h > 0, h, NEG_SLOPE * h)  # leaky_relu
        out_ref[0] = ((x + h) if residual else h).astype(out_ref.dtype)

    return kernel


# ----------------------------------------------------------------------------- wrapper
@functools.partial(jax.jit, static_argnames=("residual", "single_buffer_consts"))
def _pointwise_net_impl(x, beta, context, params, residual, single_buffer_consts):
    B, N, D = x.shape
    dims = [params[0][0].shape[0]] + [W.shape[1] for (W, _, _, _, _) in params]
    L = len(params)

    # --- tiling: pad N so the grid divides exactly (fixes dropped-rows bug) and
    #     cap tile_n so the 512-wide intermediate stays small even for huge N.
    tile_n = min(MAX_TILE_N, _round_up(N, 8))
    n_pad = _round_up(N, tile_n)
    x_p = jnp.pad(x, ((0, 0), (0, n_pad - N), (0, 0))) if n_pad != N else x
    n_tiles = n_pad // tile_n

    # --- hyper-network glue (tiny per-batch matmuls): gate + effective bias.
    beta1 = beta.reshape(B, 1)
    time_emb = jnp.concatenate([beta1, jnp.sin(beta1), jnp.cos(beta1)], axis=-1)  # (B,3)
    ctx_emb = jnp.concatenate([time_emb, context], axis=-1)                       # (B,F+3)

    gates, ebiases = [], []
    for (W, bvec, Wg, bg, Wb) in params:
        dout = W.shape[1]
        gate = jax.nn.sigmoid(ctx_emb @ Wg + bg)          # (B, dout)
        hbias = ctx_emb @ Wb                              # (B, dout)
        ebias = bvec[None, :] * gate + hbias              # fold b: (h@W+b)*g+hb == h@W*g + (b*g+hb)
        pad = MAXD - dout
        gates.append(jnp.pad(gate, ((0, 0), (0, pad))))
        ebiases.append(jnp.pad(ebias, ((0, 0), (0, pad))))
    gb_all = jnp.stack([jnp.stack(gates, axis=1),
                        jnp.stack(ebiases, axis=1)], axis=2)      # (B, L, 2, MAXD) f32

    # --- kernel inputs / specs
    inputs = [x_p]
    in_specs = [pl.BlockSpec((1, tile_n, D), lambda b, n: (b, n, 0))]

    for (W, _, _, _, _) in params:
        din, dout = W.shape
        inputs.append(W.astype(jnp.bfloat16))              # bf16 weights: 2-3x MXU rate, half DMA
        if single_buffer_consts:
            spec = pl.BlockSpec((din, dout), lambda b, n: (0, 0),
                                pipeline_mode=pl.Buffered(1))     # constant operand
        else:
            spec = pl.BlockSpec((din, dout), lambda b, n: (0, 0))
        in_specs.append(spec)

    inputs.append(gb_all)
    in_specs.append(pl.BlockSpec((1, L, 2, MAXD), lambda b, n: (b, 0, 0, 0)))

    flops = 2 * B * n_pad * sum(a * c for a, c in zip(dims[:-1], dims[1:]))
    bytes_accessed = (x_p.size * 4 * 2                       # x in + out
                      + gb_all.size * 4
                      + sum(W.size * 2 for (W, _, _, _, _) in params))

    out = pl.pallas_call(
        _make_kernel(dims, residual),
        out_shape=jax.ShapeDtypeStruct((B, n_pad, D), x.dtype),
        grid=(B, n_tiles),
        in_specs=in_specs,
        out_specs=pl.BlockSpec((1, tile_n, D), lambda b, n: (b, n, 0)),
        compiler_params=pltpu.CompilerParams(
            dimension_semantics=("parallel", "parallel"),
            vmem_limit_bytes=32 * 1024 * 1024),
        cost_estimate=pl.CostEstimate(
            flops=flops, transcendentals=0, bytes_accessed=bytes_accessed),
    )(*inputs)

    return out[:, :N, :] if n_pad != N else out


def pointwise_net(x, beta, context, params, residual=True):
    """x: (B, N, 3) f32, beta: (B,) f32, context: (B, F) f32."""
    try:
        return _pointwise_net_impl(x, beta, context, params,
                                   residual=residual, single_buffer_consts=True)
    except Exception:
        # Fallback for JAX builds without BlockSpec(pipeline_mode=pl.Buffered(1)).
        return _pointwise_net_impl(x, beta, context, params,
                                   residual=residual, single_buffer_consts=False)


# ----------------------------------------------------------------------------- params
def init_params(key, context_dim):
    dim_ctx = context_dim + 3
    params = []
    for i in range(len(LAYER_DIMS) - 1):
        din, dout = LAYER_DIMS[i], LAYER_DIMS[i + 1]
        key, k1, k2, k3, k4, k5 = jax.random.split(key, 6)
        W = jax.random.normal(k1, (din, dout), jnp.float32) / jnp.sqrt(din)           # _layer.weight^T
        b = jax.random.normal(k2, (dout,), jnp.float32) * 0.01                        # _layer.bias
        Wg = jax.random.normal(k3, (dim_ctx, dout), jnp.float32) / jnp.sqrt(dim_ctx)  # _hyper_gate.weight^T
        bg = jax.random.normal(k4, (dout,), jnp.float32) * 0.01                       # _hyper_gate.bias
        Wb = jax.random.normal(k5, (dim_ctx, dout), jnp.float32) / jnp.sqrt(dim_ctx)  # _hyper_bias.weight^T
        params.append((W, b, Wg, bg, Wb))
    return params


# ----------------------------------------------------------------------------- reference
def pointwise_net_ref(x, beta, context, params, residual=True):
    """Pure-JAX reference mirroring the kernel's bf16-input / f32-accum matmuls."""
    B = x.shape[0]
    b1 = beta.reshape(B, 1, 1)
    time_emb = jnp.concatenate([b1, jnp.sin(b1), jnp.cos(b1)], axis=-1)
    ctx_emb = jnp.concatenate([time_emb, context.reshape(B, 1, -1)], axis=-1)
    h = x
    for i, (W, bvec, Wg, bg, Wb) in enumerate(params):
        gate = jax.nn.sigmoid(ctx_emb @ Wg + bg)           # (B,1,dout)
        hbias = ctx_emb @ Wb                               # (B,1,dout)
        y = jax.lax.dot_general(h.astype(jnp.bfloat16), W.astype(jnp.bfloat16),
                                (((2,), (0,)), ((), ())),
                                preferred_element_type=jnp.float32)
        h = (y + bvec) * gate + hbias                      # exact ConcatSquashLinear order
        if i < len(params) - 1:
            h = jnp.where(h > 0, h, NEG_SLOPE * h)
    return x + h if residual else h


# ----------------------------------------------------------------------------- main
if __name__ == "__main__":
    key = jax.random.PRNGKey(0)
    kx, kb, kc, kp = jax.random.split(key, 4)

    B, N, D, CTX = 2, 8, 3, 16
    x = jax.random.normal(kx, (B, N, D), jnp.float32)
    beta = jax.random.uniform(kb, (B,), jnp.float32)
    context = jax.random.normal(kc, (B, CTX), jnp.float32)
    params = init_params(kp, CTX)

    out = jax.block_until_ready(pointwise_net(x, beta, context, params, residual=True))

    ref = pointwise_net_ref(x, beta, context, params, residual=True)
    assert out.shape == (B, N, D)
    assert jnp.allclose(out, ref, atol=2e-3, rtol=2e-3), "mismatch vs reference"

    print("KERNEL_OK")
</pallas_src>

<mosaic_0001>
module attributes {stable_mosaic.version = 11 : i64} {
  func.func @kernel(%arg0: i32, %arg1: i32, %arg2: memref<1x8x3xf32, #tpu.memory_space<vmem>>, %arg3: memref<3x128xbf16, #tpu.memory_space<vmem>>, %arg4: memref<128x256xbf16, #tpu.memory_space<vmem>>, %arg5: memref<256x512xbf16, #tpu.memory_space<vmem>>, %arg6: memref<512x256xbf16, #tpu.memory_space<vmem>>, %arg7: memref<256x128xbf16, #tpu.memory_space<vmem>>, %arg8: memref<128x3xbf16, #tpu.memory_space<vmem>>, %arg9: memref<1x6x2x512xf32, #tpu.memory_space<vmem>>, %arg10: memref<1x8x3xf32, #tpu.memory_space<vmem>>) attributes {dimension_semantics = [#tpu.dimension_semantics<parallel>, #tpu.dimension_semantics<parallel>], iteration_bounds = array<i64: 2, 1>, scalar_prefetch = 0 : i64, scratch_operands = 0 : i64, tpu.core_type = #tpu.core_type<tc>, window_params = [{transform_indices = @transform_0, window_bounds = array<i64: 1, 8, 3>}, {pipeline_mode = #tpu.pipeline_mode<synchronous>, transform_indices = @transform_1, window_bounds = array<i64: 3, 128>}, {pipeline_mode = #tpu.pipeline_mode<synchronous>, transform_indices = @transform_2, window_bounds = array<i64: 128, 256>}, {pipeline_mode = #tpu.pipeline_mode<synchronous>, transform_indices = @transform_3, window_bounds = array<i64: 256, 512>}, {pipeline_mode = #tpu.pipeline_mode<synchronous>, transform_indices = @transform_4, window_bounds = array<i64: 512, 256>}, {pipeline_mode = #tpu.pipeline_mode<synchronous>, transform_indices = @transform_5, window_bounds = array<i64: 256, 128>}, {pipeline_mode = #tpu.pipeline_mode<synchronous>, transform_indices = @transform_6, window_bounds = array<i64: 128, 3>}, {transform_indices = @transform_7, window_bounds = array<i64: 1, 6, 2, 512>}, {transform_indices = @transform_8, window_bounds = array<i64: 1, 8, 3>}]} {
    %c0 = arith.constant 0 : index
    %c0_0 = arith.constant 0 : index
    %c0_1 = arith.constant 0 : index
    %0 = vector.load %arg2[%c0, %c0_0, %c0_1] : memref<1x8x3xf32, #tpu.memory_space<vmem>>, vector<1x8x3xf32>
    %1 = vector.shape_cast %0 : vector<1x8x3xf32> to vector<8x3xf32>
    %c0_2 = arith.constant 0 : index
    %c0_3 = arith.constant 0 : index
    %2 = vector.load %arg3[%c0_2, %c0_3] : memref<3x128xbf16, #tpu.memory_space<vmem>>, vector<3x128xbf16>
    %c0_4 = arith.constant 0 : index
    %c0_5 = arith.constant 0 : index
    %c0_6 = arith.constant 0 : index
    %c0_7 = arith.constant 0 : index
    %3 = vector.load %arg9[%c0_4, %c0_5, %c0_6, %c0_7] : memref<1x6x2x512xf32, #tpu.memory_space<vmem>>, vector<1x1x2x512xf32>
    %4 = vector.shape_cast %3 : vector<1x1x2x512xf32> to vector<2x512xf32>
    %5 = vector.extract_strided_slice %4 {offsets = [0, 0], sizes = [1, 128], strides = [1, 1]} : vector<2x512xf32> to vector<1x128xf32>
    %6 = vector.extract_strided_slice %4 {offsets = [1, 0], sizes = [1, 128], strides = [1, 1]} : vector<2x512xf32> to vector<1x128xf32>
    %7 = arith.truncf %1 : vector<8x3xf32> to vector<8x3xbf16>
    %cst = arith.constant dense<0.000000e+00> : vector<8x128xf32>
    %8 = tpu.matmul %7, %2, %cst {dimension_numbers = #tpu.dot_dimension_numbers<[1], [0], [0], [1], [0, 0, 1, 1], [], []>} : vector<8x3xbf16>, vector<3x128xbf16>, vector<8x128xf32> -> vector<8x128xf32>
    %9 = vector.broadcast %5 : vector<1x128xf32> to vector<8x128xf32>
    %10 = arith.mulf %8, %9 : vector<8x128xf32>
    %11 = vector.broadcast %6 : vector<1x128xf32> to vector<8x128xf32>
    %12 = arith.addf %10, %11 : vector<8x128xf32>
    %cst_8 = arith.constant 0.000000e+00 : f32
    %13 = vector.broadcast %cst_8 : f32 to vector<8x128xf32>
    %14 = arith.cmpf ogt, %12, %13 : vector<8x128xf32>
    %cst_9 = arith.constant 0.00999999977 : f32
    %15 = vector.broadcast %cst_9 : f32 to vector<8x128xf32>
    %16 = arith.mulf %15, %12 : vector<8x128xf32>
    %17 = arith.select %14, %12, %16 : vector<8x128xi1>, vector<8x128xf32>
    %c0_10 = arith.constant 0 : index
    %c0_11 = arith.constant 0 : index
    %18 = vector.load %arg4[%c0_10, %c0_11] : memref<128x256xbf16, #tpu.memory_space<vmem>>, vector<128x256xbf16>
    %c0_12 = arith.constant 0 : index
    %c1 = arith.constant 1 : index
    %c0_13 = arith.constant 0 : index
    %c0_14 = arith.constant 0 : index
    %19 = vector.load %arg9[%c0_12, %c1, %c0_13, %c0_14] : memref<1x6x2x512xf32, #tpu.memory_space<vmem>>, vector<1x1x2x512xf32>
    %20 = vector.shape_cast %19 : vector<1x1x2x512xf32> to vector<2x512xf32>
    %21 = vector.extract_strided_slice %20 {offsets = [0, 0], sizes = [1, 256], strides = [1, 1]} : vector<2x512xf32> to vector<1x256xf32>
    %22 = vector.extract_strided_slice %20 {offsets = [1, 0], sizes = [1, 256], strides = [1, 1]} : vector<2x512xf32> to vector<1x256xf32>
    %23 = arith.truncf %17 : vector<8x128xf32> to vector<8x128xbf16>
    %cst_15 = arith.constant dense<0.000000e+00> : vector<8x256xf32>
    %24 = tpu.matmul %23, %18, %cst_15 {dimension_numbers = #tpu.dot_dimension_numbers<[1], [0], [0], [1], [0, 0, 1, 1], [], []>} : vector<8x128xbf16>, vector<128x256xbf16>, vector<8x256xf32> -> vector<8x256xf32>
    %25 = vector.broadcast %21 : vector<1x256xf32> to vector<8x256xf32>
    %26 = arith.mulf %24, %25 : vector<8x256xf32>
    %27 = vector.broadcast %22 : vector<1x256xf32> to vector<8x256xf32>
    %28 = arith.addf %26, %27 : vector<8x256xf32>
    %cst_16 = arith.constant 0.000000e+00 : f32
    %29 = vector.broadcast %cst_16 : f32 to vector<8x256xf32>
    %30 = arith.cmpf ogt, %28, %29 : vector<8x256xf32>
    %cst_17 = arith.constant 0.00999999977 : f32
    %31 = vector.broadcast %cst_17 : f32 to vector<8x256xf32>
    %32 = arith.mulf %31, %28 : vector<8x256xf32>
    %33 = arith.select %30, %28, %32 : vector<8x256xi1>, vector<8x256xf32>
    %c0_18 = arith.constant 0 : index
    %c0_19 = arith.constant 0 : index
    %34 = vector.load %arg5[%c0_18, %c0_19] : memref<256x512xbf16, #tpu.memory_space<vmem>>, vector<256x512xbf16>
    %c0_20 = arith.constant 0 : index
    %c2 = arith.constant 2 : index
    %c0_21 = arith.constant 0 : index
    %c0_22 = arith.constant 0 : index
    %35 = vector.load %arg9[%c0_20, %c2, %c0_21, %c0_22] : memref<1x6x2x512xf32, #tpu.memory_space<vmem>>, vector<1x1x2x512xf32>
    %36 = vector.shape_cast %35 : vector<1x1x2x512xf32> to vector<2x512xf32>
    %37 = vector.extract_strided_slice %36 {offsets = [0, 0], sizes = [1, 512], strides = [1, 1]} : vector<2x512xf32> to vector<1x512xf32>
    %38 = vector.extract_strided_slice %36 {offsets = [1, 0], sizes = [1, 512], strides = [1, 1]} : vector<2x512xf32> to vector<1x512xf32>
    %39 = arith.truncf %33 : vector<8x256xf32> to vector<8x256xbf16>
    %cst_23 = arith.constant dense<0.000000e+00> : vector<8x512xf32>
    %40 = tpu.matmul %39, %34, %cst_23 {dimension_numbers = #tpu.dot_dimension_numbers<[1], [0], [0], [1], [0, 0, 1, 1], [], []>} : vector<8x256xbf16>, vector<256x512xbf16>, vector<8x512xf32> -> vector<8x512xf32>
    %41 = vector.broadcast %37 : vector<1x512xf32> to vector<8x512xf32>
    %42 = arith.mulf %40, %41 : vector<8x512xf32>
    %43 = vector.broadcast %38 : vector<1x512xf32> to vector<8x512xf32>
    %44 = arith.addf %42, %43 : vector<8x512xf32>
    %cst_24 = arith.constant 0.000000e+00 : f32
    %45 = vector.broadcast %cst_24 : f32 to vector<8x512xf32>
    %46 = arith.cmpf ogt, %44, %45 : vector<8x512xf32>
    %cst_25 = arith.constant 0.00999999977 : f32
    %47 = vector.broadcast %cst_25 : f32 to vector<8x512xf32>
    %48 = arith.mulf %47, %44 : vector<8x512xf32>
    %49 = arith.select %46, %44, %48 : vector<8x512xi1>, vector<8x512xf32>
    %c0_26 = arith.constant 0 : index
    %c0_27 = arith.constant 0 : index
    %50 = vector.load %arg6[%c0_26, %c0_27] : memref<512x256xbf16, #tpu.memory_space<vmem>>, vector<512x256xbf16>
    %c0_28 = arith.constant 0 : index
    %c3 = arith.constant 3 : index
    %c0_29 = arith.constant 0 : index
    %c0_30 = arith.constant 0 : index
    %51 = vector.load %arg9[%c0_28, %c3, %c0_29, %c0_30] : memref<1x6x2x512xf32, #tpu.memory_space<vmem>>, vector<1x1x2x512xf32>
    %52 = vector.shape_cast %51 : vector<1x1x2x512xf32> to vector<2x512xf32>
    %53 = vector.extract_strided_slice %52 {offsets = [0, 0], sizes = [1, 256], strides = [1, 1]} : vector<2x512xf32> to vector<1x256xf32>
    %54 = vector.extract_strided_slice %52 {offsets = [1, 0], sizes = [1, 256], strides = [1, 1]} : vector<2x512xf32> to vector<1x256xf32>
    %55 = arith.truncf %49 : vector<8x512xf32> to vector<8x512xbf16>
    %cst_31 = arith.constant dense<0.000000e+00> : vector<8x256xf32>
    %56 = tpu.matmul %55, %50, %cst_31 {dimension_numbers = #tpu.dot_dimension_numbers<[1], [0], [0], [1], [0, 0, 1, 1], [], []>} : vector<8x512xbf16>, vector<512x256xbf16>, vector<8x256xf32> -> vector<8x256xf32>
    %57 = vector.broadcast %53 : vector<1x256xf32> to vector<8x256xf32>
    %58 = arith.mulf %56, %57 : vector<8x256xf32>
    %59 = vector.broadcast %54 : vector<1x256xf32> to vector<8x256xf32>
    %60 = arith.addf %58, %59 : vector<8x256xf32>
    %cst_32 = arith.constant 0.000000e+00 : f32
    %61 = vector.broadcast %cst_32 : f32 to vector<8x256xf32>
    %62 = arith.cmpf ogt, %60, %61 : vector<8x256xf32>
    %cst_33 = arith.constant 0.00999999977 : f32
    %63 = vector.broadcast %cst_33 : f32 to vector<8x256xf32>
    %64 = arith.mulf %63, %60 : vector<8x256xf32>
    %65 = arith.select %62, %60, %64 : vector<8x256xi1>, vector<8x256xf32>
    %c0_34 = arith.constant 0 : index
    %c0_35 = arith.constant 0 : index
    %66 = vector.load %arg7[%c0_34, %c0_35] : memref<256x128xbf16, #tpu.memory_space<vmem>>, vector<256x128xbf16>
    %c0_36 = arith.constant 0 : index
    %c4 = arith.constant 4 : index
    %c0_37 = arith.constant 0 : index
    %c0_38 = arith.constant 0 : index
    %67 = vector.load %arg9[%c0_36, %c4, %c0_37, %c0_38] : memref<1x6x2x512xf32, #tpu.memory_space<vmem>>, vector<1x1x2x512xf32>
    %68 = vector.shape_cast %67 : vector<1x1x2x512xf32> to vector<2x512xf32>
    %69 = vector.extract_strided_slice %68 {offsets = [0, 0], sizes = [1, 128], strides = [1, 1]} : vector<2x512xf32> to vector<1x128xf32>
    %70 = vector.extract_strided_slice %68 {offsets = [1, 0], sizes = [1, 128], strides = [1, 1]} : vector<2x512xf32> to vector<1x128xf32>
    %71 = arith.truncf %65 : vector<8x256xf32> to vector<8x256xbf16>
    %cst_39 = arith.constant dense<0.000000e+00> : vector<8x128xf32>
    %72 = tpu.matmul %71, %66, %cst_39 {dimension_numbers = #tpu.dot_dimension_numbers<[1], [0], [0], [1], [0, 0, 1, 1], [], []>} : vector<8x256xbf16>, vector<256x128xbf16>, vector<8x128xf32> -> vector<8x128xf32>
    %73 = vector.broadcast %69 : vector<1x128xf32> to vector<8x128xf32>
    %74 = arith.mulf %72, %73 : vector<8x128xf32>
    %75 = vector.broadcast %70 : vector<1x128xf32> to vector<8x128xf32>
    %76 = arith.addf %74, %75 : vector<8x128xf32>
    %cst_40 = arith.constant 0.000000e+00 : f32
    %77 = vector.broadcast %cst_40 : f32 to vector<8x128xf32>
    %78 = arith.cmpf ogt, %76, %77 : vector<8x128xf32>
    %cst_41 = arith.constant 0.00999999977 : f32
    %79 = vector.broadcast %cst_41 : f32 to vector<8x128xf32>
    %80 = arith.mulf %79, %76 : vector<8x128xf32>
    %81 = arith.select %78, %76, %80 : vector<8x128xi1>, vector<8x128xf32>
    %c0_42 = arith.constant 0 : index
    %c0_43 = arith.constant 0 : index
    %82 = vector.load %arg8[%c0_42, %c0_43] : memref<128x3xbf16, #tpu.memory_space<vmem>>, vector<128x3xbf16>
    %c0_44 = arith.constant 0 : index
    %c5 = arith.constant 5 : index
    %c0_45 = arith.constant 0 : index
    %c0_46 = arith.constant 0 : index
    %83 = vector.load %arg9[%c0_44, %c5, %c0_45, %c0_46] : memref<1x6x2x512xf32, #tpu.memory_space<vmem>>, vector<1x1x2x512xf32>
    %84 = vector.shape_cast %83 : vector<1x1x2x512xf32> to vector<2x512xf32>
    %85 = vector.extract_strided_slice %84 {offsets = [0, 0], sizes = [1, 3], strides = [1, 1]} : vector<2x512xf32> to vector<1x3xf32>
    %86 = vector.extract_strided_slice %84 {offsets = [1, 0], sizes = [1, 3], strides = [1, 1]} : vector<2x512xf32> to vector<1x3xf32>
    %87 = arith.truncf %81 : vector<8x128xf32> to vector<8x128xbf16>
    %cst_47 = arith.constant dense<0.000000e+00> : vector<8x3xf32>
    %88 = tpu.matmul %87, %82, %cst_47 {dimension_numbers = #tpu.dot_dimension_numbers<[1], [0], [0], [1], [0, 0, 1, 1], [], []>} : vector<8x128xbf16>, vector<128x3xbf16>, vector<8x3xf32> -> vector<8x3xf32>
    %89 = vector.broadcast %85 : vector<1x3xf32> to vector<8x3xf32>
    %90 = arith.mulf %88, %89 : vector<8x3xf32>
    %91 = vector.broadcast %86 : vector<1x3xf32> to vector<8x3xf32>
    %92 = arith.addf %90, %91 : vector<8x3xf32>
    %93 = arith.addf %1, %92 : vector<8x3xf32>
    %c0_48 = arith.constant 0 : index
    %c0_49 = arith.constant 0 : index
    %c0_50 = arith.constant 0 : index
    %94 = vector.load %arg10[%c0_48, %c0_49, %c0_50] : memref<1x8x3xf32, #tpu.memory_space<vmem>>, vector<1x8x3xf32>
    %95 = vector.shape_cast %94 : vector<1x8x3xf32> to vector<8x3xf32>
    %96 = vector.shape_cast %93 : vector<8x3xf32> to vector<1x8x3xf32>
    tpu.vector_store %arg10[%c0_48, %c0_49, %c0_50], %96 {strides = array<i32>} : memref<1x8x3xf32, #tpu.memory_space<vmem>>, vector<1x8x3xf32>,
    return
  }
  func.func @transform_0(%arg0: i32, %arg1: i32) -> (i32, i32, i32) {
    %c0_i32 = arith.constant 0 : i32
    %c0_i32_0 = arith.constant 0 : i32
    return %arg0, %arg1, %c0_i32 : i32, i32, i32
  }
  func.func @transform_1(%arg0: i32, %arg1: i32) -> (i32, i32) {
    %c0_i32 = arith.constant 0 : i32
    %c0_i32_0 = arith.constant 0 : i32
    %c0_i32_1 = arith.constant 0 : i32
    return %c0_i32, %c0_i32_0 : i32, i32
  }
  func.func @transform_2(%arg0: i32, %arg1: i32) -> (i32, i32) {
    %c0_i32 = arith.constant 0 : i32
    %c0_i32_0 = arith.constant 0 : i32
    %c0_i32_1 = arith.constant 0 : i32
    return %c0_i32, %c0_i32_0 : i32, i32
  }
  func.func @transform_3(%arg0: i32, %arg1: i32) -> (i32, i32) {
    %c0_i32 = arith.constant 0 : i32
    %c0_i32_0 = arith.constant 0 : i32
    %c0_i32_1 = arith.constant 0 : i32
    return %c0_i32, %c0_i32_0 : i32, i32
  }
  func.func @transform_4(%arg0: i32, %arg1: i32) -> (i32, i32) {
    %c0_i32 = arith.constant 0 : i32
    %c0_i32_0 = arith.constant 0 : i32
    %c0_i32_1 = arith.constant 0 : i32
    return %c0_i32, %c0_i32_0 : i32, i32
  }
  func.func @transform_5(%arg0: i32, %arg1: i32) -> (i32, i32) {
    %c0_i32 = arith.constant 0 : i32
    %c0_i32_0 = arith.constant 0 : i32
    %c0_i32_1 = arith.constant 0 : i32
    return %c0_i32, %c0_i32_0 : i32, i32
  }
  func.func @transform_6(%arg0: i32, %arg1: i32) -> (i32, i32) {
    %c0_i32 = arith.constant 0 : i32
    %c0_i32_0 = arith.constant 0 : i32
    %c0_i32_1 = arith.constant 0 : i32
    return %c0_i32, %c0_i32_0 : i32, i32
  }
  func.func @transform_7(%arg0: i32, %arg1: i32) -> (i32, i32, i32, i32) {
    %c0_i32 = arith.constant 0 : i32
    %c0_i32_0 = arith.constant 0 : i32
    %c0_i32_1 = arith.constant 0 : i32
    %c0_i32_2 = arith.constant 0 : i32
    return %arg0, %c0_i32, %c0_i32_0, %c0_i32_1 : i32, i32, i32, i32
  }
  func.func @transform_8(%arg0: i32, %arg1: i32) -> (i32, i32, i32) {
    %c0_i32 = arith.constant 0 : i32
    %c0_i32_0 = arith.constant 0 : i32
    return %arg0, %arg1, %c0_i32 : i32, i32, i32
  }
}

module attributes {stable_mosaic.version = 11 : i64} {
  func.func @kernel(%arg0: i32, %arg1: i32, %arg2: memref<1x8x3xf32, #tpu.memory_space<vmem>>, %arg3: memref<3x128xbf16, #tpu.memory_space<vmem>>, %arg4: memref<128x256xbf16, #tpu.memory_space<vmem>>, %arg5: memref<256x512xbf16, #tpu.memory_space<vmem>>, %arg6: memref<512x256xbf16, #tpu.memory_space<vmem>>, %arg7: memref<256x128xbf16, #tpu.memory_space<vmem>>, %arg8: memref<128x3xbf16, #tpu.memory_space<vmem>>, %arg9: memref<1x6x2x512xf32, #tpu.memory_space<vmem>>, %arg10: memref<1x8x3xf32, #tpu.memory_space<vmem>>) attributes {dimension_semantics = [#tpu.dimension_semantics<parallel>, #tpu.dimension_semantics<parallel>], iteration_bounds = array<i64: 2, 1>, scalar_prefetch = 0 : i64, scratch_operands = 0 : i64, tpu.core_type = #tpu.core_type<tc>, window_params = [{transform_indices = @transform_0, window_bounds = array<i64: 1, 8, 3>}, {pipeline_mode = #tpu.pipeline_mode<synchronous>, transform_indices = @transform_1, window_bounds = array<i64: 3, 128>}, {pipeline_mode = #tpu.pipeline_mode<synchronous>, transform_indices = @transform_2, window_bounds = array<i64: 128, 256>}, {pipeline_mode = #tpu.pipeline_mode<synchronous>, transform_indices = @transform_3, window_bounds = array<i64: 256, 512>}, {pipeline_mode = #tpu.pipeline_mode<synchronous>, transform_indices = @transform_4, window_bounds = array<i64: 512, 256>}, {pipeline_mode = #tpu.pipeline_mode<synchronous>, transform_indices = @transform_5, window_bounds = array<i64: 256, 128>}, {pipeline_mode = #tpu.pipeline_mode<synchronous>, transform_indices = @transform_6, window_bounds = array<i64: 128, 3>}, {transform_indices = @transform_7, window_bounds = array<i64: 1, 6, 2, 512>}, {transform_indices = @transform_8, window_bounds = array<i64: 1, 8, 3>}]} {
    %c0 = arith.constant 0 : index
    %c0_0 = arith.constant 0 : index
    %c0_1 = arith.constant 0 : index
    %0 = vector.load %arg2[%c0, %c0_0, %c0_1] : memref<1x8x3xf32, #tpu.memory_space<vmem>>, vector<1x8x3xf32>
    %1 = vector.shape_cast %0 : vector<1x8x3xf32> to vector<8x3xf32>
    %c0_2 = arith.constant 0 : index
    %c0_3 = arith.constant 0 : index
    %2 = vector.load %arg3[%c0_2, %c0_3] : memref<3x128xbf16, #tpu.memory_space<vmem>>, vector<3x128xbf16>
    %c0_4 = arith.constant 0 : index
    %c0_5 = arith.constant 0 : index
    %c0_6 = arith.constant 0 : index
    %c0_7 = arith.constant 0 : index
    %3 = vector.load %arg9[%c0_4, %c0_5, %c0_6, %c0_7] : memref<1x6x2x512xf32, #tpu.memory_space<vmem>>, vector<1x1x2x512xf32>
    %4 = vector.shape_cast %3 : vector<1x1x2x512xf32> to vector<2x512xf32>
    %5 = vector.extract_strided_slice %4 {offsets = [0, 0], sizes = [1, 128], strides = [1, 1]} : vector<2x512xf32> to vector<1x128xf32>
    %6 = vector.extract_strided_slice %4 {offsets = [1, 0], sizes = [1, 128], strides = [1, 1]} : vector<2x512xf32> to vector<1x128xf32>
    %7 = arith.truncf %1 : vector<8x3xf32> to vector<8x3xbf16>
    %cst = arith.constant dense<0.000000e+00> : vector<8x128xf32>
    %8 = tpu.matmul %7, %2, %cst {dimension_numbers = #tpu.dot_dimension_numbers<[1], [0], [0], [1], [0, 0, 1, 1], [], []>} : vector<8x3xbf16>, vector<3x128xbf16>, vector<8x128xf32> -> vector<8x128xf32>
    %9 = vector.broadcast %5 : vector<1x128xf32> to vector<8x128xf32>
    %10 = arith.mulf %8, %9 : vector<8x128xf32>
    %11 = vector.broadcast %6 : vector<1x128xf32> to vector<8x128xf32>
    %12 = arith.addf %10, %11 : vector<8x128xf32>
    %cst_8 = arith.constant 0.000000e+00 : f32
    %13 = vector.broadcast %cst_8 : f32 to vector<8x128xf32>
    %14 = arith.cmpf ogt, %12, %13 : vector<8x128xf32>
    %cst_9 = arith.constant 0.00999999977 : f32
    %15 = vector.broadcast %cst_9 : f32 to vector<8x128xf32>
    %16 = arith.mulf %15, %12 : vector<8x128xf32>
    %17 = arith.select %14, %12, %16 : vector<8x128xi1>, vector<8x128xf32>
    %c0_10 = arith.constant 0 : index
    %c0_11 = arith.constant 0 : index
    %18 = vector.load %arg4[%c0_10, %c0_11] : memref<128x256xbf16, #tpu.memory_space<vmem>>, vector<128x256xbf16>
    %c0_12 = arith.constant 0 : index
    %c1 = arith.constant 1 : index
    %c0_13 = arith.constant 0 : index
    %c0_14 = arith.constant 0 : index
    %19 = vector.load %arg9[%c0_12, %c1, %c0_13, %c0_14] : memref<1x6x2x512xf32, #tpu.memory_space<vmem>>, vector<1x1x2x512xf32>
    %20 = vector.shape_cast %19 : vector<1x1x2x512xf32> to vector<2x512xf32>
    %21 = vector.extract_strided_slice %20 {offsets = [0, 0], sizes = [1, 256], strides = [1, 1]} : vector<2x512xf32> to vector<1x256xf32>
    %22 = vector.extract_strided_slice %20 {offsets = [1, 0], sizes = [1, 256], strides = [1, 1]} : vector<2x512xf32> to vector<1x256xf32>
    %23 = arith.truncf %17 : vector<8x128xf32> to vector<8x128xbf16>
    %cst_15 = arith.constant dense<0.000000e+00> : vector<8x256xf32>
    %24 = tpu.matmul %23, %18, %cst_15 {dimension_numbers = #tpu.dot_dimension_numbers<[1], [0], [0], [1], [0, 0, 1, 1], [], []>} : vector<8x128xbf16>, vector<128x256xbf16>, vector<8x256xf32> -> vector<8x256xf32>
    %25 = vector.broadcast %21 : vector<1x256xf32> to vector<8x256xf32>
    %26 = arith.mulf %24, %25 : vector<8x256xf32>
    %27 = vector.broadcast %22 : vector<1x256xf32> to vector<8x256xf32>
    %28 = arith.addf %26, %27 : vector<8x256xf32>
    %cst_16 = arith.constant 0.000000e+00 : f32
    %29 = vector.broadcast %cst_16 : f32 to vector<8x256xf32>
    %30 = arith.cmpf ogt, %28, %29 : vector<8x256xf32>
    %cst_17 = arith.constant 0.00999999977 : f32
    %31 = vector.broadcast %cst_17 : f32 to vector<8x256xf32>
    %32 = arith.mulf %31, %28 : vector<8x256xf32>
    %33 = arith.select %30, %28, %32 : vector<8x256xi1>, vector<8x256xf32>
    %c0_18 = arith.constant 0 : index
    %c0_19 = arith.constant 0 : index
    %34 = vector.load %arg5[%c0_18, %c0_19] : memref<256x512xbf16, #tpu.memory_space<vmem>>, vector<256x512xbf16>
    %c0_20 = arith.constant 0 : index
    %c2 = arith.constant 2 : index
    %c0_21 = arith.constant 0 : index
    %c0_22 = arith.constant 0 : index
    %35 = vector.load %arg9[%c0_20, %c2, %c0_21, %c0_22] : memref<1x6x2x512xf32, #tpu.memory_space<vmem>>, vector<1x1x2x512xf32>
    %36 = vector.shape_cast %35 : vector<1x1x2x512xf32> to vector<2x512xf32>
    %37 = vector.extract_strided_slice %36 {offsets = [0, 0], sizes = [1, 512], strides = [1, 1]} : vector<2x512xf32> to vector<1x512xf32>
    %38 = vector.extract_strided_slice %36 {offsets = [1, 0], sizes = [1, 512], strides = [1, 1]} : vector<2x512xf32> to vector<1x512xf32>
    %39 = arith.truncf %33 : vector<8x256xf32> to vector<8x256xbf16>
    %cst_23 = arith.constant dense<0.000000e+00> : vector<8x512xf32>
    %40 = tpu.matmul %39, %34, %cst_23 {dimension_numbers = #tpu.dot_dimension_numbers<[1], [0], [0], [1], [0, 0, 1, 1], [], []>} : vector<8x256xbf16>, vector<256x512xbf16>, vector<8x512xf32> -> vector<8x512xf32>
    %41 = vector.broadcast %37 : vector<1x512xf32> to vector<8x512xf32>
    %42 = arith.mulf %40, %41 : vector<8x512xf32>
    %43 = vector.broadcast %38 : vector<1x512xf32> to vector<8x512xf32>
    %44 = arith.addf %42, %43 : vector<8x512xf32>
    %cst_24 = arith.constant 0.000000e+00 : f32
    %45 = vector.broadcast %cst_24 : f32 to vector<8x512xf32>
    %46 = arith.cmpf ogt, %44, %45 : vector<8x512xf32>
    %cst_25 = arith.constant 0.00999999977 : f32
    %47 = vector.broadcast %cst_25 : f32 to vector<8x512xf32>
    %48 = arith.mulf %47, %44 : vector<8x512xf32>
    %49 = arith.select %46, %44, %48 : vector<8x512xi1>, vector<8x512xf32>
    %c0_26 = arith.constant 0 : index
    %c0_27 = arith.constant 0 : index
    %50 = vector.load %arg6[%c0_26, %c0_27] : memref<512x256xbf16, #tpu.memory_space<vmem>>, vector<512x256xbf16>
    %c0_28 = arith.constant 0 : index
    %c3 = arith.constant 3 : index
    %c0_29 = arith.constant 0 : index
    %c0_30 = arith.constant 0 : index
    %51 = vector.load %arg9[%c0_28, %c3, %c0_29, %c0_30] : memref<1x6x2x512xf32, #tpu.memory_space<vmem>>, vector<1x1x2x512xf32>
    %52 = vector.shape_cast %51 : vector<1x1x2x512xf32> to vector<2x512xf32>
    %53 = vector.extract_strided_slice %52 {offsets = [0, 0], sizes = [1, 256], strides = [1, 1]} : vector<2x512xf32> to vector<1x256xf32>
    %54 = vector.extract_strided_slice %52 {offsets = [1, 0], sizes = [1, 256], strides = [1, 1]} : vector<2x512xf32> to vector<1x256xf32>
    %55 = arith.truncf %49 : vector<8x512xf32> to vector<8x512xbf16>
    %cst_31 = arith.constant dense<0.000000e+00> : vector<8x256xf32>
    %56 = tpu.matmul %55, %50, %cst_31 {dimension_numbers = #tpu.dot_dimension_numbers<[1], [0], [0], [1], [0, 0, 1, 1], [], []>} : vector<8x512xbf16>, vector<512x256xbf16>, vector<8x256xf32> -> vector<8x256xf32>
    %57 = vector.broadcast %53 : vector<1x256xf32> to vector<8x256xf32>
    %58 = arith.mulf %56, %57 : vector<8x256xf32>
    %59 = vector.broadcast %54 : vector<1x256xf32> to vector<8x256xf32>
    %60 = arith.addf %58, %59 : vector<8x256xf32>
    %cst_32 = arith.constant 0.000000e+00 : f32
    %61 = vector.broadcast %cst_32 : f32 to vector<8x256xf32>
    %62 = arith.cmpf ogt, %60, %61 : vector<8x256xf32>
    %cst_33 = arith.constant 0.00999999977 : f32
    %63 = vector.broadcast %cst_33 : f32 to vector<8x256xf32>
    %64 = arith.mulf %63, %60 : vector<8x256xf32>
    %65 = arith.select %62, %60, %64 : vector<8x256xi1>, vector<8x256xf32>
    %c0_34 = arith.constant 0 : index
    %c0_35 = arith.constant 0 : index
    %66 = vector.load %arg7[%c0_34, %c0_35] : memref<256x128xbf16, #tpu.memory_space<vmem>>, vector<256x128xbf16>
    %c0_36 = arith.constant 0 : index
    %c4 = arith.constant 4 : index
    %c0_37 = arith.constant 0 : index
    %c0_38 = arith.constant 0 : index
    %67 = vector.load %arg9[%c0_36, %c4, %c0_37, %c0_38] : memref<1x6x2x512xf32, #tpu.memory_space<vmem>>, vector<1x1x2x512xf32>
    %68 = vector.shape_cast %67 : vector<1x1x2x512xf32> to vector<2x512xf32>
    %69 = vector.extract_strided_slice %68 {offsets = [0, 0], sizes = [1, 128], strides = [1, 1]} : vector<2x512xf32> to vector<1x128xf32>
    %70 = vector.extract_strided_slice %68 {offsets = [1, 0], sizes = [1, 128], strides = [1, 1]} : vector<2x512xf32> to vector<1x128xf32>
    %71 = arith.truncf %65 : vector<8x256xf32> to vector<8x256xbf16>
    %cst_39 = arith.constant dense<0.000000e+00> : vector<8x128xf32>
    %72 = tpu.matmul %71, %66, %cst_39 {dimension_numbers = #tpu.dot_dimension_numbers<[1], [0], [0], [1], [0, 0, 1, 1], [], []>} : vector<8x256xbf16>, vector<256x128xbf16>, vector<8x128xf32> -> vector<8x128xf32>
    %73 = vector.broadcast %69 : vector<1x128xf32> to vector<8x128xf32>
    %74 = arith.mulf %72, %73 : vector<8x128xf32>
    %75 = vector.broadcast %70 : vector<1x128xf32> to vector<8x128xf32>
    %76 = arith.addf %74, %75 : vector<8x128xf32>
    %cst_40 = arith.constant 0.000000e+00 : f32
    %77 = vector.broadcast %cst_40 : f32 to vector<8x128xf32>
    %78 = arith.cmpf ogt, %76, %77 : vector<8x128xf32>
    %cst_41 = arith.constant 0.00999999977 : f32
    %79 = vector.broadcast %cst_41 : f32 to vector<8x128xf32>
    %80 = arith.mulf %79, %76 : vector<8x128xf32>
    %81 = arith.select %78, %76, %80 : vector<8x128xi1>, vector<8x128xf32>
    %c0_42 = arith.constant 0 : index
    %c0_43 = arith.constant 0 : index
    %82 = vector.load %arg8[%c0_42, %c0_43] : memref<128x3xbf16, #tpu.memory_space<vmem>>, vector<128x3xbf16>
    %c0_44 = arith.constant 0 : index
    %c5 = arith.constant 5 : index
    %c0_45 = arith.constant 0 : index
    %c0_46 = arith.constant 0 : index
    %83 = vector.load %arg9[%c0_44, %c5, %c0_45, %c0_46] : memref<1x6x2x512xf32, #tpu.memory_space<vmem>>, vector<1x1x2x512xf32>
    %84 = vector.shape_cast %83 : vector<1x1x2x512xf32> to vector<2x512xf32>
    %85 = vector.extract_strided_slice %84 {offsets = [0, 0], sizes = [1, 3], strides = [1, 1]} : vector<2x512xf32> to vector<1x3xf32>
    %86 = vector.extract_strided_slice %84 {offsets = [1, 0], sizes = [1, 3], strides = [1, 1]} : vector<2x512xf32> to vector<1x3xf32>
    %87 = arith.truncf %81 : vector<8x128xf32> to vector<8x128xbf16>
    %cst_47 = arith.constant dense<0.000000e+00> : vector<8x3xf32>
    %88 = tpu.matmul %87, %82, %cst_47 {dimension_numbers = #tpu.dot_dimension_numbers<[1], [0], [0], [1], [0, 0, 1, 1], [], []>} : vector<8x128xbf16>, vector<128x3xbf16>, vector<8x3xf32> -> vector<8x3xf32>
    %89 = vector.broadcast %85 : vector<1x3xf32> to vector<8x3xf32>
    %90 = arith.mulf %88, %89 : vector<8x3xf32>
    %91 = vector.broadcast %86 : vector<1x3xf32> to vector<8x3xf32>
    %92 = arith.addf %90, %91 : vector<8x3xf32>
    %93 = arith.addf %1, %92 : vector<8x3xf32>
    %c0_48 = arith.constant 0 : index
    %c0_49 = arith.constant 0 : index
    %c0_50 = arith.constant 0 : index
    %94 = vector.load %arg10[%c0_48, %c0_49, %c0_50] : memref<1x8x3xf32, #tpu.memory_space<vmem>>, vector<1x8x3xf32>
    %95 = vector.shape_cast %94 : vector<1x8x3xf32> to vector<8x3xf32>
    %96 = vector.shape_cast %93 : vector<8x3xf32> to vector<1x8x3xf32>
    tpu.vector_store %arg10[%c0_48, %c0_49, %c0_50], %96 {strides = array<i32>} : memref<1x8x3xf32, #tpu.memory_space<vmem>>, vector<1x8x3xf32>,
    return
  }
  func.func @transform_0(%arg0: i32, %arg1: i32) -> (i32, i32, i32) {
    %c0_i32 = arith.constant 0 : i32
    %c0_i32_0 = arith.constant 0 : i32
    return %arg0, %arg1, %c0_i32 : i32, i32, i32
  }
  func.func @transform_1(%arg0: i32, %arg1: i32) -> (i32, i32) {
    %c0_i32 = arith.constant 0 : i32
    %c0_i32_0 = arith.constant 0 : i32
    %c0_i32_1 = arith.constant 0 : i32
    return %c0_i32, %c0_i32_0 : i32, i32
  }
  func.func @transform_2(%arg0: i32, %arg1: i32) -> (i32, i32) {
    %c0_i32 = arith.constant 0 : i32
    %c0_i32_0 = arith.constant 0 : i32
    %c0_i32_1 = arith.constant 0 : i32
    return %c0_i32, %c0_i32_0 : i32, i32
  }
  func.func @transform_3(%arg0: i32, %arg1: i32) -> (i32, i32) {
    %c0_i32 = arith.constant 0 : i32
    %c0_i32_0 = arith.constant 0 : i32
    %c0_i32_1 = arith.constant 0 : i32
    return %c0_i32, %c0_i32_0 : i32, i32
  }
  func.func @transform_4(%arg0: i32, %arg1: i32) -> (i32, i32) {
    %c0_i32 = arith.constant 0 : i32
    %c0_i32_0 = arith.constant 0 : i32
    %c0_i32_1 = arith.constant 0 : i32
    return %c0_i32, %c0_i32_0 : i32, i32
  }
  func.func @transform_5(%arg0: i32, %arg1: i32) -> (i32, i32) {
    %c0_i32 = arith.constant 0 : i32
    %c0_i32_0 = arith.constant 0 : i32
    %c0_i32_1 = arith.constant 0 : i32
    return %c0_i32, %c0_i32_0 : i32, i32
  }
  func.func @transform_6(%arg0: i32, %arg1: i32) -> (i32, i32) {
    %c0_i32 = arith.constant 0 : i32
    %c0_i32_0 = arith.constant 0 : i32
    %c0_i32_1 = arith.constant 0 : i32
    return %c0_i32, %c0_i32_0 : i32, i32
  }
  func.func @transform_7(%arg0: i32, %arg1: i32) -> (i32, i32, i32, i32) {
    %c0_i32 = arith.constant 0 : i32
    %c0_i32_0 = arith.constant 0 : i32
    %c0_i32_1 = arith.constant 0 : i32
    %c0_i32_2 = arith.constant 0 : i32
    return %arg0, %c0_i32, %c0_i32_0, %c0_i32_1 : i32, i32, i32, i32
  }
  func.func @transform_8(%arg0: i32, %arg1: i32) -> (i32, i32, i32) {
    %c0_i32 = arith.constant 0 : i32
    %c0_i32_0 = arith.constant 0 : i32
    return %arg0, %arg1, %c0_i32 : i32, i32, i32
  }
}

</mosaic_0001>

<bundles_post_ra>
// kernel: _pointwise_net_impl.1
= control target key start
LH: loop header
LB: loop body
LE: loop exit
PB: predicated region body
PF: predicated region fallthrough
CT: control target
= control target key end

     0   :  { %s2670_s27 = smov 0   ;;  %s2672_s28 = smov 0   ;;  %s3305_s0 = inlined_call_operand.vmem [shape: f32[2,8,3], index: 0, kind: input, shape index: {}]   ;;  %s3306_s1 = inlined_call_operand.vmem [shape: bf16[3,128], index: 1, kind: input, shape index: {}]   ;;  %s3307_s2 = inlined_call_operand.vmem [shape: bf16[128,256], index: 2, kind: input, shape index: {}]   ;;  %s3308_s3 = inlined_call_operand.vmem [shape: bf16[256,512], index: 3, kind: input, shape index: {}]   ;;  %s3309_s4 = inlined_call_operand.vmem [shape: bf16[512,256], index: 4, kind: input, shape index: {}]   ;;  %s3310_s5 = inlined_call_operand.vmem [shape: bf16[256,128], index: 5, kind: input, shape index: {}]   ;;  %s3311_s6 = inlined_call_operand.vmem [shape: bf16[128,3], index: 6, kind: input, shape index: {}]   ;;  %s3312_s7 = inlined_call_operand.vmem [shape: f32[2,6,2,512], index: 7, kind: input, shape index: {}]   ;;  %s3313_s8 = inlined_call_operand.vmem [shape: f32[2,8,3], index: 8, kind: output, shape index: {}]  }
   0x1   :  { %s2674_s29 = smov 0  }
   0x2 LB: > { %s30_s30 = sadd.s32 1, %s2615_s28  ;;  %p2084_p0 = scmp.ge.s32.totalorder %s2619_s29, 1  ;;  %s2619_s29 = sphi %s2674_s29, %s18_s29   ;;  %s2615_s28 = sphi %s2672_s28, %s3315_s28   ;;  %s2611_s27 = sphi %s2670_s27, %s3314_s27  }
   0x3   : > { %p32_p1 = scmp.ge.s32.totalorder %s30_s30, 2  ;;  %p290_p2 = scmp.lt.s32.totalorder %s2619_s29, 3 }
   0x5   : > { %s3317_s30 = smov (%p32_p1, %s30_s30), 0  ;;  %p291_p3 = pnand %p2084_p0, %p290_p2 }
   0x6   : > { %v354_v0 = vld [vmem:[%s3306_s1] sm:$0x3] (!%p291_p3)  ;;  %vm361_vm0 = vcmask (!%p291_p3), 1040384   ;;  %vm362_vm1 = vcmask (!%p291_p3), 1041408   ;;  %v2621_v1 = vmov (!%p291_p3), 0.0   ;;  %v2622_v2 = vmov (!%p291_p3), 65535  }
   0x7   : > { %294 = sbr.rel (%p291_p3) target bundleno = 1417 (0x589), region = 52  ;;  %2297 = vmatprep.subr.bf16.mxu1 (!%p291_p3), %v2621_v1  ;;  %v363_v3 = vsel (!%p291_p3), %vm361_vm0, 4294967295, %v2622_v2  ;;  %p333_p4 = scmp.lt.s32.totalorder (!%p291_p3), %s2611_s27, 1  ;;  %vm2623_vm2 = vmmov (!%p291_p3), 0   ;;  %v2358_v5 = vld [vmem:[%s3307_s2 + $0x4] ss:$8 sps:$4 sm:$0xff] (!%p291_p3)   ;;  %v408_v52 = vlaneseq (!%p291_p3) }
   0x8   : > { %v364_v4 = vsel (!%p291_p3), %vm362_vm1, %v363_v3, 0  ;;  %2299 = vmatprep.mubr.msk.bf16.mxu1 (!%p291_p3), %vm2623_vm2, %v2621_v1  ;;  %vm357_vm3 = vcmask (!%p291_p3), 23552   ;;  %v2356_v8 = vld [vmem:[%s3307_s2] ss:$8 sps:$4 sm:$0xff] (!%p291_p3)   ;;  %v2361_v10 = vld [vmem:[%s3307_s2 + $0x14] ss:$8 sps:$4 sm:$0xff] (!%p291_p3)  }
   0x9   : > { %v366_v6 = vand.u32 (!%p291_p3), %v364_v4, %v354_v0  ;;  %v2359_v11 = vld [vmem:[%s3307_s2 + $0x10] ss:$8 sps:$4 sm:$0xff] (!%p291_p3)   ;;  %v2364_v12 = vld [vmem:[%s3307_s2 + $0x24] ss:$8 sps:$4 sm:$0xff] (!%p291_p3)   ;;  %v2362_v13 = vld [vmem:[%s3307_s2 + $0x20] ss:$8 sps:$4 sm:$0xff] (!%p291_p3)  }
   0xa   : > { %v2367_v14 = vld [vmem:[%s3307_s2 + $0x34] ss:$8 sps:$4 sm:$0xff] (!%p291_p3)   ;;  %v2365_v15 = vld [vmem:[%s3307_s2 + $0x30] ss:$8 sps:$4 sm:$0xff] (!%p291_p3)   ;;  %v2370_v16 = vld [vmem:[%s3307_s2 + $0x44] ss:$8 sps:$4 sm:$0xff] (!%p291_p3)  }
   0xb   : > { %2298 = vmatpush3.bf16.msra.mxu1 (!%p291_p3), %v366_v6  ;;  %v2368_v17 = vld [vmem:[%s3307_s2 + $0x40] ss:$8 sps:$4 sm:$0xff] (!%p291_p3)   ;;  %v2373_v18 = vld [vmem:[%s3307_s2 + $0x54] ss:$8 sps:$4 sm:$0xff] (!%p291_p3)   ;;  %v2371_v19 = vld [vmem:[%s3307_s2 + $0x50] ss:$8 sps:$4 sm:$0xff] (!%p291_p3)  }
   0xc   : > { %520 = vmatprep.subr.bf16.mxu1 (!%p291_p3), %v2358_v5  ;;  %v2376_v20 = vld [vmem:[%s3307_s2 + $0x64] ss:$8 sps:$4 sm:$0xff] (!%p291_p3)   ;;  %v2374_v21 = vld [vmem:[%s3307_s2 + $0x60] ss:$8 sps:$4 sm:$0xff] (!%p291_p3)   ;;  %v2379_v22 = vld [vmem:[%s3307_s2 + $0x74] ss:$8 sps:$4 sm:$0xff] (!%p291_p3)  }
   0xd   : > { %v2377_v23 = vld [vmem:[%s3307_s2 + $0x70] ss:$8 sps:$4 sm:$0xff] (!%p291_p3)   ;;  %v2624_v24 = vmov (!%p291_p3), 0   ;;  %v2380_v25 = vld [vmem:[%s3308_s3 + $0x4] ss:$16 sps:$4 sm:$0xff] (!%p291_p3)   ;;  %v2836_v53 = vshrl.u32 (!%p291_p3), %v408_v52, 7 }
   0xe   : > { %s3319_s27 = smov (!%p333_p4, %s2611_s27), 1  ;;  %v2384_v26 = vld [vmem:[%s3308_s3 + $0xc] ss:$16 sps:$4 sm:$0xff]   ;;  %v2385_v27 = vld [vmem:[%s3308_s3] ss:$16 sps:$4 sm:$0xff]   ;;  %996 = vmatprep.subr.bf16.mxu0 %v2380_v25 }
   0xf   : > { %s2085_s13 = sshll.u32 %s3319_s27, 3  ;;  %v2386_v28 = vld [vmem:[%s3308_s3 + $0x24] ss:$16 sps:$4 sm:$0xff]   ;;  %997 = vmatpush1.bf16.msra.mxu0 %v2385_v27  ;;  %v2391_v29 = vld [vmem:[%s3308_s3 + $0x20] ss:$16 sps:$4 sm:$0xff]   ;;  %s2327_s21 = smul.u32 48, %s3319_s27 }
  0x10   : > { %s2705_s16 = scalar_lea.vmem %s3305_s0, %s2085_s13  ;;  %998 = vmatprep.subr.bf16.mxu0 %v2386_v28  ;;  %v2392_v30 = vld [vmem:[%s3308_s3 + $0x44] ss:$16 sps:$4 sm:$0xff]   ;;  %v2397_v31 = vld [vmem:[%s3308_s3 + $0x40] ss:$16 sps:$4 sm:$0xff]   ;;  %v2844_v54 = vsub.s32 0, %v2836_v53  ;;  %v2848_v56 = vsub.s32 1, %v2836_v53 }
  0x11   : > { %v353_v7 = vld [vmem:[%s2705_s16] sm:$0xff]  ;;  %s2841_s24 = scalar_lea.vmem %s3312_s7, %s2327_s21  ;;  %v2382_v4 = vld [vmem:[%s3308_s3 + $0x8] ss:$16 sps:$4 sm:$0xff]   ;;  %v2390_v6 = vld [vmem:[%s3308_s3 + $0x2c] ss:$16 sps:$4 sm:$0xff]   ;;  %s351_s21 = scalar_lea.vmem %s3313_s8, %s2085_s13 }
  0x12   : > { %v356_v9 = vpack.c.bf16 %v353_v7, %v353_v7  ;;  %v2398_v32 = vld [vmem:[%s3308_s3 + $0x64] ss:$16 sps:$4 sm:$0xff]   ;;  %v2403_v33 = vld [vmem:[%s3308_s3 + $0x60] ss:$16 sps:$4 sm:$0xff]   ;;  %v2388_v7 = vld [vmem:[%s3308_s3 + $0x28] ss:$16 sps:$4 sm:$0xff]  }
  0x13   : > { %999 = vmatpush1.bf16.msra.mxu0 %v2391_v29  ;;  %v2404_v34 = vld [vmem:[%s3308_s3 + $0x84] ss:$16 sps:$4 sm:$0xff]   ;;  %v2409_v35 = vld [vmem:[%s3308_s3 + $0x80] ss:$16 sps:$4 sm:$0xff]   ;;  %v2442_v25 = vld [vmem:[%s3308_s3 + $0x148] ss:$16 sps:$4 sm:$0xff]  }
  0x14   : > { %2300 = vmatmul.mubr.msk.bf16.vlgmr.msra.gmra.mrb[0].mxu1 %vm357_vm3, %v356_v9  ;;  %1000 = vmatprep.subr.bf16.mxu0 %v2392_v30  ;;  %v2410_v36 = vld [vmem:[%s3308_s3 + $0xa4] ss:$16 sps:$4 sm:$0xff]   ;;  %v2415_v37 = vld [vmem:[%s3308_s3 + $0xa0] ss:$16 sps:$4 sm:$0xff]   ;;  %v2394_v9 = vld [vmem:[%s3308_s3 + $0x48] ss:$16 sps:$4 sm:$0xff]  }
  0x15   : > { %521 = vmatpush1.bf16.msra.mxu1 %v2356_v8  ;;  %552 = vmatprep.mubr.bf16.mxu1 %v2624_v24  ;;  %v2416_v38 = vld [vmem:[%s3308_s3 + $0xc4] ss:$16 sps:$4 sm:$0xff]   ;;  %v2421_v39 = vld [vmem:[%s3308_s3 + $0xc0] ss:$16 sps:$4 sm:$0xff]   ;;  %v2396_v8 = vld [vmem:[%s3308_s3 + $0x4c] ss:$16 sps:$4 sm:$0xff]  }
  0x16   : > { %522 = vmatprep.subr.bf16.mxu1 %v2361_v10  ;;  %v2422_v40 = vld [vmem:[%s3308_s3 + $0xe4] ss:$16 sps:$4 sm:$0xff]   ;;  %v2427_v41 = vld [vmem:[%s3308_s3 + $0xe0] ss:$16 sps:$4 sm:$0xff]   ;;  %v2402_v10 = vld [vmem:[%s3308_s3 + $0x6c] ss:$16 sps:$4 sm:$0xff]  }
  0x17   : > { %1001 = vmatpush1.bf16.msra.mxu0 %v2397_v31  ;;  %v2428_v42 = vld [vmem:[%s3308_s3 + $0x104] ss:$16 sps:$4 sm:$0xff]   ;;  %v2433_v43 = vld [vmem:[%s3308_s3 + $0x100] ss:$16 sps:$4 sm:$0xff]   ;;  %v2444_v24 = vld [vmem:[%s3308_s3 + $0x14c] ss:$16 sps:$4 sm:$0xff]  }
  0x18   : > { %1002 = vmatprep.subr.bf16.mxu0 %v2398_v32  ;;  %v2434_v44 = vld [vmem:[%s3308_s3 + $0x124] ss:$16 sps:$4 sm:$0xff]   ;;  %v2439_v45 = vld [vmem:[%s3308_s3 + $0x120] ss:$16 sps:$4 sm:$0xff]   ;;  %v2448_v27 = vld [vmem:[%s3308_s3 + $0x168] ss:$16 sps:$4 sm:$0xff]  }
  0x19   : > { %523 = vmatpush1.bf16.msra.mxu1 %v2359_v11  ;;  %v2440_v46 = vld [vmem:[%s3308_s3 + $0x144] ss:$16 sps:$4 sm:$0xff]   ;;  %v2445_v47 = vld [vmem:[%s3308_s3 + $0x140] ss:$16 sps:$4 sm:$0xff]   ;;  %v2400_v11 = vld [vmem:[%s3308_s3 + $0x68] ss:$16 sps:$4 sm:$0xff]  }
  0x1a   : > { %524 = vmatprep.subr.bf16.mxu1 %v2364_v12  ;;  %v2446_v48 = vld [vmem:[%s3308_s3 + $0x164] ss:$16 sps:$4 sm:$0xff]   ;;  %v2451_v49 = vld [vmem:[%s3308_s3 + $0x160] ss:$16 sps:$4 sm:$0xff]   ;;  %v2408_v12 = vld [vmem:[%s3308_s3 + $0x8c] ss:$16 sps:$4 sm:$0xff]  }
  0x1b   : > { %1003 = vmatpush1.bf16.msra.mxu0 %v2403_v33  ;;  %v2452_v50 = vld [vmem:[%s3308_s3 + $0x184] ss:$16 sps:$4 sm:$0xff]   ;;  %v2457_v51 = vld [vmem:[%s3308_s3 + $0x180] ss:$16 sps:$4 sm:$0xff]   ;;  %v2456_v28 = vld [vmem:[%s3308_s3 + $0x18c] ss:$16 sps:$4 sm:$0xff]  }
  0x1c   : > { %1004 = vmatprep.subr.bf16.mxu0 %v2404_v34  ;;  %v355_v55 = vld [vmem:[%s2841_s24] sm:$0xff]  ;;  %v2454_v29 = vld [vmem:[%s3308_s3 + $0x188] ss:$16 sps:$4 sm:$0xff]   ;;  %v2462_v31 = vld [vmem:[%s3308_s3 + $0x1ac] ss:$16 sps:$4 sm:$0xff]  }
  0x1d   : > { %525 = vmatpush1.bf16.msra.mxu1 %v2362_v13  ;;  %v411_v57 = vrot.slane %v355_v55, %v2844_v54  ;;  %v416_v58 = vrot.slane %v355_v55, %v2848_v56  ;;  %v2406_v13 = vld [vmem:[%s3308_s3 + $0x88] ss:$16 sps:$4 sm:$0xff]   ;;  %v2458_v30 = vld [vmem:[%s3308_s3 + $0x1a4] ss:$16 sps:$4 sm:$0xff]   ;;  %v2463_v33 = vld [vmem:[%s3308_s3 + $0x1a0] ss:$16 sps:$4 sm:$0xff]  }
  0x1e   : > { %526 = vmatprep.subr.bf16.mxu1 %v2367_v14  ;;  %v2414_v14 = vld [vmem:[%s3308_s3 + $0xac] ss:$16 sps:$4 sm:$0xff]   ;;  %v2460_v32 = vld [vmem:[%s3308_s3 + $0x1a8] ss:$16 sps:$4 sm:$0xff]   ;;  %v2464_v34 = vld [vmem:[%s3308_s3 + $0x1c4] ss:$16 sps:$4 sm:$0xff]  }
  0x1f   : > { %1005 = vmatpush1.bf16.msra.mxu0 %v2409_v35  ;;  %v2468_v35 = vld [vmem:[%s3308_s3 + $0x1cc] ss:$16 sps:$4 sm:$0xff]  }
  0x20   : > { %1006 = vmatprep.subr.bf16.mxu0 %v2410_v36  ;;  %v2466_v36 = vld [vmem:[%s3308_s3 + $0x1c8] ss:$16 sps:$4 sm:$0xff]  }
  0x21   : > { %527 = vmatpush1.bf16.msra.mxu1 %v2365_v15  ;;  %v2412_v15 = vld [vmem:[%s3308_s3 + $0xa8] ss:$16 sps:$4 sm:$0xff]  }
  0x22   : > { %528 = vmatprep.subr.bf16.mxu1 %v2370_v16  ;;  %v2420_v16 = vld [vmem:[%s3308_s3 + $0xcc] ss:$16 sps:$4 sm:$0xff]  }
  0x23   : > { %1007 = vmatpush1.bf16.msra.mxu0 %v2415_v37  ;;  %v2469_v37 = vld [vmem:[%s3308_s3 + $0x1c0] ss:$16 sps:$4 sm:$0xff]  }
  0x24   : > { %1008 = vmatprep.subr.bf16.mxu0 %v2416_v38  ;;  %v2470_v38 = vld [vmem:[%s3308_s3 + $0x1e4] ss:$16 sps:$4 sm:$0xff]  }
  0x25   : > { %529 = vmatpush1.bf16.msra.mxu1 %v2368_v17  ;;  %v2418_v17 = vld [vmem:[%s3308_s3 + $0xc8] ss:$16 sps:$4 sm:$0xff]  }
  0x26   : > { %530 = vmatprep.subr.bf16.mxu1 %v2373_v18  ;;  %v2426_v18 = vld [vmem:[%s3308_s3 + $0xec] ss:$16 sps:$4 sm:$0xff]  }
  0x27   : > { %1009 = vmatpush1.bf16.msra.mxu0 %v2421_v39  ;;  %v2472_v39 = vld [vmem:[%s3308_s3 + $0x1e8] ss:$16 sps:$4 sm:$0xff]  }
  0x28   : > { %1010 = vmatprep.subr.bf16.mxu0 %v2422_v40  ;;  %v2474_v40 = vld [vmem:[%s3308_s3 + $0x1ec] ss:$16 sps:$4 sm:$0xff]  }
  0x29   : > { %531 = vmatpush1.bf16.msra.mxu1 %v2371_v19  ;;  %v2424_v19 = vld [vmem:[%s3308_s3 + $0xe8] ss:$16 sps:$4 sm:$0xff]  }
  0x2a   : > { %532 = vmatprep.subr.bf16.mxu1 %v2376_v20  ;;  %v2432_v20 = vld [vmem:[%s3308_s3 + $0x10c] ss:$16 sps:$4 sm:$0xff]  }
  0x2b   : > { %1011 = vmatpush1.bf16.msra.mxu0 %v2427_v41  ;;  %v2475_v41 = vld [vmem:[%s3308_s3 + $0x1e0] ss:$16 sps:$4 sm:$0xff]  }
  0x2c   : > { %1012 = vmatprep.subr.bf16.mxu0 %v2428_v42  ;;  %v2478_v42 = vld [vmem:[%s3309_s4 + $0x4] ss:$8 sps:$4 sm:$0xff]  }
  0x2d   : > { %533 = vmatpush1.bf16.msra.mxu1 %v2374_v21  ;;  %v2430_v21 = vld [vmem:[%s3308_s3 + $0x108] ss:$16 sps:$4 sm:$0xff]  }
  0x2e   : > { %534 = vmatprep.subr.bf16.mxu1 %v2379_v22  ;;  %v2438_v22 = vld [vmem:[%s3308_s3 + $0x12c] ss:$16 sps:$4 sm:$0xff]  }
  0x2f   : > { %1013 = vmatpush1.bf16.msra.mxu0 %v2433_v43  ;;  %v2089_v43 = vld [vmem:[%s2841_s24 + $0x8] sm:$0xff] }
  0x30   : > { %1014 = vmatprep.subr.bf16.mxu0 %v2434_v44  ;;  %v2968_v44 = vsub.s32 2, %v2836_v53 }
  0x31   : > { %535 = vmatpush1.bf16.msra.mxu1 %v2377_v23  ;;  %v2436_v23 = vld [vmem:[%s3308_s3 + $0x128] ss:$16 sps:$4 sm:$0xff]  }
  0x32   : > { %1037 = vmatprep.subr.bf16.mxu1 %v2384_v26  ;;  %v2450_v26 = vld [vmem:[%s3308_s3 + $0x16c] ss:$16 sps:$4 sm:$0xff]  }
  0x33   : > { %1015 = vmatpush1.bf16.msra.mxu0 %v2439_v45  ;;  %v2971_v45 = vsub.s32 3, %v2836_v53 }
  0x34   : > { %1016 = vmatprep.subr.bf16.mxu0 %v2440_v46  ;;  %v565_v46 = vrot.slane %v2089_v43, %v2844_v54 }
  0x37   : > { %1017 = vmatpush1.bf16.msra.mxu0 %v2445_v47  ;;  %v569_v47 = vrot.slane %v2089_v43, %v2968_v44 }
  0x38   : > { %1018 = vmatprep.subr.bf16.mxu0 %v2446_v48  ;;  %v585_v48 = vrot.slane %v2089_v43, %v2848_v56 }
  0x3a   : > { %v595_v52 = vrot.slane %v585_v48, %v2848_v56  ;;  %v2578_v48 = vld [vmem:[%s3310_s5 + $0x58] sm:$0xff]  }
  0x3b   : > { %1019 = vmatpush1.bf16.msra.mxu0 %v2451_v49  ;;  %v589_v49 = vrot.slane %v2089_v43, %v2971_v45  ;;  %v2575_v43 = vld [vmem:[%s3310_s5 + $0x8] sm:$0xff]  }
  0x3c   : > { %1020 = vmatprep.subr.bf16.mxu0 %v2452_v50  ;;  %v575_v50 = vrot.slane %v565_v46, %v2844_v54  ;;  %v2576_v46 = vld [vmem:[%s3310_s5 + $0x50] sm:$0xff]  }
  0x3f   : > { %1021 = vmatpush1.bf16.msra.mxu0 %v2457_v51  ;;  %v579_v51 = vrot.slane %v569_v47, %v2844_v54  ;;  %v2577_v47 = vld [vmem:[%s3310_s5 + $0x10] sm:$0xff]  }
  0x40   : > { %1022 = vmatprep.subr.bf16.mxu0 %v2458_v30  ;;  %v2509_v30 = vld [vmem:[%s3309_s4 + $0xb0] ss:$8 sps:$4 sm:$0xff]  }
  0x43   : > { %1023 = vmatpush1.bf16.msra.mxu0 %v2463_v33  ;;  %v2517_v33 = vld [vmem:[%s3309_s4 + $0xd4] ss:$8 sps:$4 sm:$0xff]  }
  0x44   : > { %1024 = vmatprep.subr.bf16.mxu0 %v2464_v34  ;;  %v2515_v34 = vld [vmem:[%s3309_s4 + $0xd0] ss:$8 sps:$4 sm:$0xff]  }
  0x47   : > { %1025 = vmatpush1.bf16.msra.mxu0 %v2469_v37  ;;  %v2523_v37 = vld [vmem:[%s3309_s4 + $0xf4] ss:$8 sps:$4 sm:$0xff]  }
  0x48   : > { %1026 = vmatprep.subr.bf16.mxu0 %v2470_v38  ;;  %v2521_v38 = vld [vmem:[%s3309_s4 + $0xf0] ss:$8 sps:$4 sm:$0xff]  }
  0x4b   : > { %1027 = vmatpush1.bf16.msra.mxu0 %v2475_v41  ;;  %v2573_v41 = vld [vmem:[%s3310_s5] sm:$0xff]  }
  0x4c   : > { %1561 = vmatprep.subr.bf16.mxu0 %v2478_v42  ;;  %v2574_v42 = vld [vmem:[%s3310_s5 + $0x48] sm:$0xff]  }
  0xe7   : > { %v402_v59 = vpop.f32.mrb[0].mxu1 }
  0xe8   : > { %v412_v60 = vmul.f32 %v411_v57, %v402_v59  ;;  %v2301_v61 = vpop.f32.mrb[1].mxu1  ;;  %v599_v57 = vrot.slane %v589_v49, %v2848_v56  ;;  %v2579_v49 = vld [vmem:[%s3310_s5 + $0x18] sm:$0xff]  }
  0xe9   : > { %v405_v62 = vpop.f32.mrb[2].mxu1 }
  0xea   : > { %v417_v63 = vadd.f32 %v416_v58, %v412_v60  ;;  %v2302_v0 = vpop.f32.mrb[3].mxu1 }
  0xec   : > { %vm418_vm4 = vcmp.gt.f32.partialorder %v417_v63, 0.0  ;;  %v419_v2 = vmul.f32 0.01, %v417_v63 }
  0xee   : > { %v420_v3 = vsel %vm418_vm4, %v417_v63, %v419_v2 }
  0xef   : > { %v439_v5 = vpack.c.bf16 %v420_v3, %v420_v3 }
  0xf1   : > { %553 = vmatmul.mubr.bf16.vlgmr.msra.gmra.mrb[4].mxu1 %v439_v5 }
  0xf2   : > { %1038 = vmatpush1.bf16.msra.mxu1 %v2382_v4 }
  0xf3   : > { %1039 = vmatprep.subr.bf16.mxu1 %v2390_v6 }
  0xf6   : > { %1040 = vmatpush1.bf16.msra.mxu1 %v2388_v7  ;;  %v2476_v7 = vld [vmem:[%s3309_s4] ss:$8 sps:$4 sm:$0xff]  }
  0xf7   : > { %1041 = vmatprep.subr.bf16.mxu1 %v2396_v8 }
  0xfa   : > { %1042 = vmatpush1.bf16.msra.mxu1 %v2394_v9  ;;  %v2481_v9 = vld [vmem:[%s3309_s4 + $0x14] ss:$8 sps:$4 sm:$0xff]  }
  0xfb   : > { %1043 = vmatprep.subr.bf16.mxu1 %v2402_v10  ;;  %v2479_v10 = vld [vmem:[%s3309_s4 + $0x10] ss:$8 sps:$4 sm:$0xff]  }
  0xfe   : > { %1044 = vmatpush1.bf16.msra.mxu1 %v2400_v11  ;;  %v2484_v11 = vld [vmem:[%s3309_s4 + $0x24] ss:$8 sps:$4 sm:$0xff]  }
  0xff   : > { %1045 = vmatprep.subr.bf16.mxu1 %v2408_v12  ;;  %v2482_v12 = vld [vmem:[%s3309_s4 + $0x20] ss:$8 sps:$4 sm:$0xff]  }
 0x102   : > { %1046 = vmatpush1.bf16.msra.mxu1 %v2406_v13  ;;  %v2487_v13 = vld [vmem:[%s3309_s4 + $0x34] ss:$8 sps:$4 sm:$0xff]  }
 0x103   : > { %1047 = vmatprep.subr.bf16.mxu1 %v2414_v14  ;;  %v2485_v14 = vld [vmem:[%s3309_s4 + $0x30] ss:$8 sps:$4 sm:$0xff]  }
 0x106   : > { %1048 = vmatpush1.bf16.msra.mxu1 %v2412_v15  ;;  %v2490_v15 = vld [vmem:[%s3309_s4 + $0x44] ss:$8 sps:$4 sm:$0xff]  }
 0x107   : > { %1049 = vmatprep.subr.bf16.mxu1 %v2420_v16  ;;  %v2488_v16 = vld [vmem:[%s3309_s4 + $0x40] ss:$8 sps:$4 sm:$0xff]  }
 0x10a   : > { %1050 = vmatpush1.bf16.msra.mxu1 %v2418_v17  ;;  %v2493_v17 = vld [vmem:[%s3309_s4 + $0x54] ss:$8 sps:$4 sm:$0xff]  }
 0x10b   : > { %1051 = vmatprep.subr.bf16.mxu1 %v2426_v18  ;;  %v2491_v18 = vld [vmem:[%s3309_s4 + $0x50] ss:$8 sps:$4 sm:$0xff]  }
 0x10e   : > { %1052 = vmatpush1.bf16.msra.mxu1 %v2424_v19  ;;  %v2496_v19 = vld [vmem:[%s3309_s4 + $0x64] ss:$8 sps:$4 sm:$0xff]  }
 0x10f   : > { %1053 = vmatprep.subr.bf16.mxu1 %v2432_v20  ;;  %v2494_v20 = vld [vmem:[%s3309_s4 + $0x60] ss:$8 sps:$4 sm:$0xff]  }
 0x112   : > { %1054 = vmatpush1.bf16.msra.mxu1 %v2430_v21  ;;  %v2499_v21 = vld [vmem:[%s3309_s4 + $0x74] ss:$8 sps:$4 sm:$0xff]  }
 0x113   : > { %1055 = vmatprep.subr.bf16.mxu1 %v2438_v22  ;;  %v2497_v22 = vld [vmem:[%s3309_s4 + $0x70] ss:$8 sps:$4 sm:$0xff]  }
 0x116   : > { %1056 = vmatpush1.bf16.msra.mxu1 %v2436_v23  ;;  %v2502_v23 = vld [vmem:[%s3309_s4 + $0x84] ss:$8 sps:$4 sm:$0xff]  }
 0x117   : > { %1057 = vmatprep.subr.bf16.mxu1 %v2444_v24  ;;  %v2500_v24 = vld [vmem:[%s3309_s4 + $0x80] ss:$8 sps:$4 sm:$0xff]  }
 0x11a   : > { %1058 = vmatpush1.bf16.msra.mxu1 %v2442_v25  ;;  %v2505_v25 = vld [vmem:[%s3309_s4 + $0x94] ss:$8 sps:$4 sm:$0xff]  }
 0x11b   : > { %1059 = vmatprep.subr.bf16.mxu1 %v2450_v26  ;;  %v2503_v26 = vld [vmem:[%s3309_s4 + $0x90] ss:$8 sps:$4 sm:$0xff]  }
 0x11e   : > { %1060 = vmatpush1.bf16.msra.mxu1 %v2448_v27  ;;  %v2508_v27 = vld [vmem:[%s3309_s4 + $0xa4] ss:$8 sps:$4 sm:$0xff]  }
 0x11f   : > { %1061 = vmatprep.subr.bf16.mxu1 %v2456_v28  ;;  %v2506_v28 = vld [vmem:[%s3309_s4 + $0xa0] ss:$8 sps:$4 sm:$0xff]  }
 0x122   : > { %1062 = vmatpush1.bf16.msra.mxu1 %v2454_v29  ;;  %v2511_v29 = vld [vmem:[%s3309_s4 + $0xb4] ss:$8 sps:$4 sm:$0xff]  }
 0x123   : > { %1063 = vmatprep.subr.bf16.mxu1 %v2462_v31  ;;  %v2514_v31 = vld [vmem:[%s3309_s4 + $0xc4] ss:$8 sps:$4 sm:$0xff]  }
 0x126   : > { %1064 = vmatpush1.bf16.msra.mxu1 %v2460_v32  ;;  %v2512_v32 = vld [vmem:[%s3309_s4 + $0xc0] ss:$8 sps:$4 sm:$0xff]  }
 0x127   : > { %1065 = vmatprep.subr.bf16.mxu1 %v2468_v35  ;;  %v2520_v35 = vld [vmem:[%s3309_s4 + $0xe4] ss:$8 sps:$4 sm:$0xff]  }
 0x12a   : > { %1066 = vmatpush1.bf16.msra.mxu1 %v2466_v36  ;;  %v2518_v36 = vld [vmem:[%s3309_s4 + $0xe0] ss:$8 sps:$4 sm:$0xff]  }
 0x12b   : > { %1067 = vmatprep.subr.bf16.mxu1 %v2474_v40  ;;  %v2572_v40 = vld [vmem:[%s3310_s5 + $0x40] sm:$0xff]  }
 0x12e   : > { %1068 = vmatpush1.bf16.msra.mxu1 %v2472_v39  ;;  %v2526_v39 = vld [vmem:[%s3309_s4 + $0x104] ss:$8 sps:$4 sm:$0xff]  }
 0x12f   : > { %2266 = vmatprep.subr.bf16.mxu1 %v2572_v40  ;;  %v2532_v40 = vld [vmem:[%s3309_s4 + $0x124] ss:$8 sps:$4 sm:$0xff]  }
 0x1c4   : > { %v554_v55 = vpop.f32.mrb[4].mxu1 }
 0x1c5   : > { %v580_v58 = vmul.f32 %v575_v50, %v554_v55  ;;  %v556_v59 = vpop.f32.mrb[5].mxu1  ;;  %v2580_v50 = vld [vmem:[%s3310_s5 + $0x60] sm:$0xff]   ;;  %v2106_v55 = vld [vmem:[%s2841_s24 + $0x10] sm:$0xff] }
 0x1c6   : > { %v581_v60 = vmul.f32 %v579_v51, %v556_v59  ;;  %v558_v61 = vpop.f32.mrb[6].mxu1  ;;  %v2581_v51 = vld [vmem:[%s3310_s5 + $0x20] sm:$0xff]   ;;  %v1133_v59 = vsub.s32 7, %v2836_v53 }
 0x1c7   : > { %v600_v62 = vadd.f32 %v595_v52, %v580_v58  ;;  %v559_v63 = vpop.f32.mrb[7].mxu1  ;;  %v1089_v52 = vsub.s32 4, %v2836_v53  ;;  %v1129_v58 = vsub.s32 5, %v2836_v53 }
 0x1c8   : > { %v601_v0 = vadd.f32 %v599_v57, %v581_v60  ;;  %v1093_v57 = vsub.s32 6, %v2836_v53  ;;  %v1082_v60 = vrot.slane %v2106_v55, %v2844_v54 }
 0x1c9   : > { %v604_v2 = vmul.f32 0.01, %v600_v62  ;;  %vm602_vm5 = vcmp.gt.f32.partialorder %v600_v62, 0.0  ;;  %v1090_v61 = vrot.slane %v2106_v55, %v1089_v52  ;;  %v2547_v52 = vld [vmem:[%s3309_s4 + $0x174] ss:$8 sps:$4 sm:$0xff]  }
 0x1ca   : > { %vm603_vm6 = vcmp.gt.f32.partialorder %v601_v0, 0.0  ;;  %v605_v3 = vmul.f32 0.01, %v601_v0  ;;  %v1094_v63 = vrot.slane %v2106_v55, %v1093_v57  ;;  %v2550_v57 = vld [vmem:[%s3309_s4 + $0x184] ss:$8 sps:$4 sm:$0xff]  }
 0x1cb   : > { %v606_v4 = vsel %vm602_vm5, %v600_v62, %v604_v2  ;;  %v1086_v62 = vrot.slane %v2106_v55, %v2968_v44  ;;  %v1130_v2 = vrot.slane %v2106_v55, %v1129_v58  ;;  %v2548_v58 = vld [vmem:[%s3309_s4 + $0x180] ss:$8 sps:$4 sm:$0xff]  }
 0x1cc   : > { %v607_v5 = vsel %vm603_vm6, %v601_v0, %v605_v3  ;;  %v674_v8 = vpack.c.bf16 %v606_v4, %v606_v4  ;;  %v1122_v0 = vrot.slane %v2106_v55, %v2848_v56  ;;  %v1126_v3 = vrot.slane %v2106_v55, %v2971_v45 }
 0x1cd   : > { %v675_v6 = vpack.c.bf16 %v607_v5, %v607_v5  ;;  %v1134_v4 = vrot.slane %v2106_v55, %v1133_v59  ;;  %v1102_v5 = vrot.slane %v1082_v60, %v2844_v54  ;;  %v1114_v53 = vrot.slane %v1094_v63, %v2844_v54  ;;  %v2545_v55 = vld [vmem:[%s3309_s4 + $0x170] ss:$8 sps:$4 sm:$0xff]   ;;  %v2553_v59 = vld [vmem:[%s3309_s4 + $0x194] ss:$8 sps:$4 sm:$0xff]  }
 0x1ce   : > { %v2551_v60 = vld [vmem:[%s3309_s4 + $0x190] ss:$8 sps:$4 sm:$0xff]   ;;  %v2559_v63 = vld [vmem:[%s3309_s4 + $0x1b4] ss:$8 sps:$4 sm:$0xff]  }
 0x1cf   : > { %1028 = vmatprep.mubr.bf16.mxu0 %v675_v6  ;;  %1069 = vmatprep.mubr.bf16.mxu1 %v675_v6  ;;  %v1110_v6 = vrot.slane %v1090_v61, %v2844_v54  ;;  %v2556_v61 = vld [vmem:[%s3309_s4 + $0x1a4] ss:$8 sps:$4 sm:$0xff]  }
 0x1d0   : > { %1029 = vmatmul.mubr.bf16.vlgmr.msra.gmra.mrb[0].mxu0 %v674_v8  ;;  %1070 = vmatmul.mubr.bf16.vlgmr.msra.gmra.mrb[8].mxu1 %v674_v8  ;;  %v1142_v8 = vrot.slane %v1122_v0, %v2848_v56  ;;  %v2557_v0 = vld [vmem:[%s3309_s4 + $0x1b0] ss:$8 sps:$4 sm:$0xff]  }
 0x1d1   : > { %1562 = vmatpush1.bf16.msra.mxu0 %v2476_v7  ;;  %2267 = vmatpush3.bf16.msra.mxu1 %v2573_v41  ;;  %v1106_v7 = vrot.slane %v1086_v62, %v2844_v54  ;;  %v2530_v41 = vld [vmem:[%s3309_s4 + $0x120] ss:$8 sps:$4 sm:$0xff]  }
 0x1d2   : > { %1563 = vmatprep.subr.bf16.mxu0 %v2481_v9  ;;  %2268 = vmatprep.subr.bf16.mxu1 %v2574_v42  ;;  %v1150_v9 = vrot.slane %v1130_v2, %v2848_v56  ;;  %v2535_v42 = vld [vmem:[%s3309_s4 + $0x134] ss:$8 sps:$4 sm:$0xff]   ;;  %v2554_v62 = vld [vmem:[%s3309_s4 + $0x1a0] ss:$8 sps:$4 sm:$0xff]   ;;  %v2562_v2 = vld [vmem:[%s3309_s4 + $0x1c4] ss:$8 sps:$4 sm:$0xff]  }
 0x1d5   : > { %1564 = vmatpush1.bf16.msra.mxu0 %v2479_v10  ;;  %2269 = vmatpush3.bf16.msra.mxu1 %v2575_v43  ;;  %v2533_v43 = vld [vmem:[%s3309_s4 + $0x130] ss:$8 sps:$4 sm:$0xff]  }
 0x1d6   : > { %1565 = vmatprep.subr.bf16.mxu0 %v2484_v11  ;;  %2270 = vmatprep.subr.bf16.mxu1 %v2576_v46  ;;  %v2538_v46 = vld [vmem:[%s3309_s4 + $0x144] ss:$8 sps:$4 sm:$0xff]  }
 0x1d9   : > { %1566 = vmatpush1.bf16.msra.mxu0 %v2482_v12  ;;  %2271 = vmatpush3.bf16.msra.mxu1 %v2577_v47  ;;  %v1146_v12 = vrot.slane %v1126_v3, %v2848_v56  ;;  %v2536_v47 = vld [vmem:[%s3309_s4 + $0x140] ss:$8 sps:$4 sm:$0xff]  }
 0x1da   : > { %1567 = vmatprep.subr.bf16.mxu0 %v2487_v13  ;;  %2272 = vmatprep.subr.bf16.mxu1 %v2578_v48  ;;  %v1154_v13 = vrot.slane %v1134_v4, %v2848_v56  ;;  %v2541_v48 = vld [vmem:[%s3309_s4 + $0x154] ss:$8 sps:$4 sm:$0xff]   ;;  %v2560_v3 = vld [vmem:[%s3309_s4 + $0x1c0] ss:$8 sps:$4 sm:$0xff]  }
 0x1db   : > { %v2565_v4 = vld [vmem:[%s3309_s4 + $0x1d4] ss:$8 sps:$4 sm:$0xff]  }
 0x1dd   : > { %1568 = vmatpush1.bf16.msra.mxu0 %v2485_v14  ;;  %2273 = vmatpush3.bf16.msra.mxu1 %v2579_v49  ;;  %v2539_v49 = vld [vmem:[%s3309_s4 + $0x150] ss:$8 sps:$4 sm:$0xff]  }
 0x1de   : > { %1569 = vmatprep.subr.bf16.mxu0 %v2490_v15  ;;  %2274 = vmatprep.subr.bf16.mxu1 %v2580_v50  ;;  %v2544_v50 = vld [vmem:[%s3309_s4 + $0x164] ss:$8 sps:$4 sm:$0xff]  }
 0x1e1   : > { %1570 = vmatpush1.bf16.msra.mxu0 %v2488_v16  ;;  %2275 = vmatpush3.bf16.msra.mxu1 %v2581_v51  ;;  %v2542_v51 = vld [vmem:[%s3309_s4 + $0x160] ss:$8 sps:$4 sm:$0xff]  }
 0x1e2   : > { %1571 = vmatprep.subr.bf16.mxu0 %v2493_v17 }
 0x1e5   : > { %1572 = vmatpush1.bf16.msra.mxu0 %v2491_v18 }
 0x1e6   : > { %1573 = vmatprep.subr.bf16.mxu0 %v2496_v19 }
 0x1e9   : > { %1574 = vmatpush1.bf16.msra.mxu0 %v2494_v20 }
 0x1ea   : > { %1575 = vmatprep.subr.bf16.mxu0 %v2499_v21 }
 0x1ed   : > { %1576 = vmatpush1.bf16.msra.mxu0 %v2497_v22 }
 0x1ee   : > { %1577 = vmatprep.subr.bf16.mxu0 %v2502_v23 }
 0x1f1   : > { %1578 = vmatpush1.bf16.msra.mxu0 %v2500_v24 }
 0x1f2   : > { %1579 = vmatprep.subr.bf16.mxu0 %v2505_v25 }
 0x1f5   : > { %1580 = vmatpush1.bf16.msra.mxu0 %v2503_v26 }
 0x1f6   : > { %1581 = vmatprep.subr.bf16.mxu0 %v2508_v27 }
 0x1f9   : > { %1582 = vmatpush1.bf16.msra.mxu0 %v2506_v28 }
 0x1fa   : > { %1583 = vmatprep.subr.bf16.mxu0 %v2511_v29 }
 0x1fd   : > { %1584 = vmatpush1.bf16.msra.mxu0 %v2509_v30 }
 0x1fe   : > { %1585 = vmatprep.subr.bf16.mxu0 %v2514_v31 }
 0x201   : > { %1586 = vmatpush1.bf16.msra.mxu0 %v2512_v32 }
 0x202   : > { %1587 = vmatprep.subr.bf16.mxu0 %v2517_v33 }
 0x205   : > { %1588 = vmatpush1.bf16.msra.mxu0 %v2515_v34 }
 0x206   : > { %1589 = vmatprep.subr.bf16.mxu0 %v2520_v35  ;;  %v2524_v35 = vld [vmem:[%s3309_s4 + $0x100] ss:$8 sps:$4 sm:$0xff]  }
 0x209   : > { %1590 = vmatpush1.bf16.msra.mxu0 %v2518_v36 }
 0x20a   : > { %1591 = vmatprep.subr.bf16.mxu0 %v2523_v37  ;;  %v2529_v37 = vld [vmem:[%s3309_s4 + $0x114] ss:$8 sps:$4 sm:$0xff]  }
 0x20d   : > { %1592 = vmatpush1.bf16.msra.mxu0 %v2521_v38 }
 0x20e   : > { %1602 = vmatprep.subr.bf16.mxu0 %v2526_v39  ;;  %v2527_v39 = vld [vmem:[%s3309_s4 + $0x110] ss:$8 sps:$4 sm:$0xff]  }
 0x2a3   : > { %v1030_v10 = vpop.f32.mrb[0].mxu0  ;;  %v1071_v11 = vpop.f32.mrb[8].mxu1 }
 0x2a4   : > { %v1115_v14 = vmul.f32 %v1102_v5, %v1030_v10  ;;  %v1117_v15 = vmul.f32 %v1110_v6, %v1071_v11  ;;  %v1032_v16 = vpop.f32.mrb[1].mxu0  ;;  %v1073_v17 = vpop.f32.mrb[9].mxu1  ;;  %v2563_v5 = vld [vmem:[%s3309_s4 + $0x1d0] ss:$8 sps:$4 sm:$0xff]   ;;  %v2568_v6 = vld [vmem:[%s3309_s4 + $0x1e4] ss:$8 sps:$4 sm:$0xff]  }
 0x2a5   : > { %v1116_v18 = vmul.f32 %v1106_v7, %v1032_v16  ;;  %v1118_v19 = vmul.f32 %v1114_v53, %v1073_v17  ;;  %v1034_v20 = vpop.f32.mrb[2].mxu0  ;;  %v1075_v21 = vpop.f32.mrb[10].mxu1  ;;  %v2566_v7 = vld [vmem:[%s3309_s4 + $0x1e0] ss:$8 sps:$4 sm:$0xff]   ;;  %v2571_v53 = vld [vmem:[%s3309_s4 + $0x1f4] ss:$8 sps:$4 sm:$0xff]  }
 0x2a6   : > { %v1155_v22 = vadd.f32 %v1142_v8, %v1115_v14  ;;  %v3124_v23 = vadd.f32 %v1150_v9, %v1117_v15  ;;  %v1035_v24 = vpop.f32.mrb[3].mxu0  ;;  %v1076_v25 = vpop.f32.mrb[11].mxu1  ;;  %v2569_v9 = vld [vmem:[%s3309_s4 + $0x1f0] ss:$8 sps:$4 sm:$0xff]  }
 0x2a7   : > { %v1156_v26 = vadd.f32 %v1146_v12, %v1116_v18  ;;  %v1158_v27 = vadd.f32 %v1154_v13, %v1118_v19  ;;  %v2582_v12 = vld [vmem:[%s3310_s5 + $0x68] sm:$0xff]   ;;  %v2584_v14 = vld [vmem:[%s3310_s5 + $0x70] sm:$0xff]   ;;  %v2586_v16 = vld [vmem:[%s3310_s5 + $0x78] sm:$0xff]  }
 0x2a8   : > { %vm1159_vm7 = vcmp.gt.f32.partialorder %v1155_v22, 0.0  ;;  %v1163_v28 = vmul.f32 0.01, %v1155_v22  ;;  %v1165_v8 = vmul.f32 0.01, %v3124_v23  ;;  %vm1161_vm10 = vcmp.gt.f32.partialorder %v3124_v23, 0.0  ;;  %2276 = vmatprep.subr.bf16.mxu1 %v2582_v12 }
 0x2a9   : > { %v1164_v29 = vmul.f32 0.01, %v1156_v26  ;;  %v1166_v30 = vmul.f32 0.01, %v1158_v27  ;;  %vm1160_vm8 = vcmp.gt.f32.partialorder %v1156_v26, 0.0  ;;  %vm1162_vm9 = vcmp.gt.f32.partialorder %v1158_v27, 0.0 }
 0x2aa   : > { %v1167_v31 = vsel %vm1159_vm7, %v1155_v22, %v1163_v28  ;;  %v1169_v10 = vsel %vm1161_vm10, %v3124_v23, %v1165_v8  ;;  %v2583_v13 = vld [vmem:[%s3310_s5 + $0x28] sm:$0xff]   ;;  %v2585_v15 = vld [vmem:[%s3310_s5 + $0x30] sm:$0xff]   ;;  %v2587_v17 = vld [vmem:[%s3310_s5 + $0x38] sm:$0xff]  }
 0x2ab   : > { %v1168_v32 = vsel %vm1160_vm8, %v1156_v26, %v1164_v29  ;;  %v1170_v33 = vsel %vm1162_vm9, %v1158_v27, %v1166_v30  ;;  %v1237_v36 = vpack.c.bf16 %v1167_v31, %v1167_v31  ;;  %v1239_v11 = vpack.c.bf16 %v1169_v10, %v1169_v10  ;;  %2277 = vmatpush3.bf16.msra.mxu1 %v2583_v13  ;;  %v2171_v18 = vld [vmem:[%s2841_s24 + $0x18] sm:$0xff] }
 0x2ac   : > { %v1238_v34 = vpack.c.bf16 %v1168_v32, %v1168_v32  ;;  %v1240_v38 = vpack.c.bf16 %v1170_v33, %v1170_v33  ;;  %2278 = vmatprep.subr.bf16.mxu1 %v2584_v14  ;;  %v1647_v19 = vrot.slane %v2171_v18, %v2844_v54  ;;  %v1651_v20 = vrot.slane %v2171_v18, %v2968_v44 }
 0x2ad   : > { %v1667_v21 = vrot.slane %v2171_v18, %v2848_v56  ;;  %v1671_v22 = vrot.slane %v2171_v18, %v2971_v45 }
 0x2ae   : > { %1593 = vmatprep.mubr.bf16.mxu0 %v1238_v34  ;;  %v1657_v23 = vrot.slane %v1647_v19, %v2844_v54  ;;  %v1661_v24 = vrot.slane %v1651_v20, %v2844_v54 }
 0x2af   : > { %1594 = vmatmul.mubr.bf16.vlgmr.msra.gmra.mrb[4].mxu0 %v1237_v36  ;;  %2279 = vmatpush3.bf16.msra.mxu1 %v2585_v15  ;;  %v1677_v25 = vrot.slane %v1667_v21, %v2848_v56  ;;  %v1681_v27 = vrot.slane %v1671_v22, %v2848_v56 }
 0x2b0   : > { %1603 = vmatpush1.bf16.msra.mxu0 %v2524_v35  ;;  %1634 = vmatprep.mubr.bf16.mxu0 %v1240_v38  ;;  %v2588_v38 = vld [vmem:[%s3311_s6] sm:$0xff]  }
 0x2b1   : > { %1604 = vmatprep.subr.bf16.mxu0 %v2529_v37  ;;  %2280 = vmatprep.subr.bf16.mxu1 %v2586_v16 }
 0x2b3   : > { %2281 = vmatpush3.bf16.msra.mxu1 %v2587_v17 }
 0x2b4   : > { %1605 = vmatpush1.bf16.msra.mxu0 %v2527_v39  ;;  %2303 = vmatprep.subr.bf16.mxu1 %v2621_v1 }
 0x2b5   : > { %1606 = vmatprep.subr.bf16.mxu0 %v2532_v40  ;;  %v2589_v40 = vld [vmem:[%s3311_s6 + $0x8] sm:$0xff]  }
 0x2b8   : > { %1607 = vmatpush1.bf16.msra.mxu0 %v2530_v41  ;;  %v2590_v41 = vld [vmem:[%s3311_s6 + $0x10] sm:$0xff]  }
 0x2b9   : > { %1608 = vmatprep.subr.bf16.mxu0 %v2535_v42  ;;  %v2591_v42 = vld [vmem:[%s3311_s6 + $0x18] sm:$0xff]  }
 0x2bc   : > { %1609 = vmatpush1.bf16.msra.mxu0 %v2533_v43  ;;  %v2592_v43 = vld [vmem:[%s3311_s6 + $0x20] sm:$0xff]  }
 0x2bd   : > { %1610 = vmatprep.subr.bf16.mxu0 %v2538_v46  ;;  %v2593_v46 = vld [vmem:[%s3311_s6 + $0x28] sm:$0xff]  }
 0x2c0   : > { %1611 = vmatpush1.bf16.msra.mxu0 %v2536_v47  ;;  %v2594_v47 = vld [vmem:[%s3311_s6 + $0x30] sm:$0xff]  }
 0x2c1   : > { %1612 = vmatprep.subr.bf16.mxu0 %v2541_v48  ;;  %v2595_v48 = vld [vmem:[%s3311_s6 + $0x38] sm:$0xff]  }
 0x2c4   : > { %1613 = vmatpush1.bf16.msra.mxu0 %v2539_v49  ;;  %v2236_v49 = vld [vmem:[%s2841_s24 + $0x20] sm:$0xff] }
 0x2c5   : > { %1614 = vmatprep.subr.bf16.mxu0 %v2544_v50 }
 0x2c8   : > { %1615 = vmatpush1.bf16.msra.mxu0 %v2542_v51  ;;  %v1865_v51 = vrot.slane %v2236_v49, %v2844_v54 }
 0x2c9   : > { %1616 = vmatprep.subr.bf16.mxu0 %v2547_v52 }
 0x2cc   : > { %1617 = vmatpush1.bf16.msra.mxu0 %v2545_v55 }
 0x2cd   : > { %1618 = vmatprep.subr.bf16.mxu0 %v2550_v57  ;;  %v1870_v57 = vrot.slane %v2236_v49, %v2848_v56 }
 0x2d0   : > { %1619 = vmatpush1.bf16.msra.mxu0 %v2548_v58 }
 0x2d1   : > { %1620 = vmatprep.subr.bf16.mxu0 %v2553_v59 }
 0x2d4   : > { %1621 = vmatpush1.bf16.msra.mxu0 %v2551_v60 }
 0x2d5   : > { %1622 = vmatprep.subr.bf16.mxu0 %v2556_v61 }
 0x2d8   : > { %1623 = vmatpush1.bf16.msra.mxu0 %v2554_v62 }
 0x2d9   : > { %1624 = vmatprep.subr.bf16.mxu0 %v2559_v63 }
 0x2dc   : > { %1625 = vmatpush1.bf16.msra.mxu0 %v2557_v0  ;;  %v2253_v0 = vld [vmem:[%s2841_s24 + $0x28] sm:$0xff] }
 0x2dd   : > { %1626 = vmatprep.subr.bf16.mxu0 %v2562_v2  ;;  %v1985_v2 = vrot.slane %v2253_v0, %v2844_v54 }
 0x2e0   : > { %1627 = vmatpush1.bf16.msra.mxu0 %v2560_v3  ;;  %v1990_v3 = vrot.slane %v2253_v0, %v2848_v56 }
 0x2e1   : > { %1628 = vmatprep.subr.bf16.mxu0 %v2565_v4 }
 0x2e4   : > { %1629 = vmatpush1.bf16.msra.mxu0 %v2563_v5 }
 0x2e5   : > { %1630 = vmatprep.subr.bf16.mxu0 %v2568_v6 }
 0x2e8   : > { %1631 = vmatpush1.bf16.msra.mxu0 %v2566_v7 }
 0x2e9   : > { %1632 = vmatprep.subr.bf16.mxu0 %v2571_v53 }
 0x2ec   : > { %1633 = vmatpush1.bf16.msra.mxu0 %v2569_v9  ;;  %v2596_v9 = vld [vmem:[%s2705_s16] sm:$0xff] }
 0x2ef   : > { %1635 = vmatmul.mubr.bf16.vlgmr.msra.gmra.mrb[4].mxu0 %v1239_v11 }
 0x3c2   : > { %v1636_v26 = vpop.f32.mrb[4].mxu0 }
 0x3c3   : > { %v1662_v28 = vmul.f32 %v1657_v23, %v1636_v26  ;;  %v1638_v29 = vpop.f32.mrb[5].mxu0 }
 0x3c4   : > { %v1663_v30 = vmul.f32 %v1661_v24, %v1638_v29  ;;  %v1640_v31 = vpop.f32.mrb[6].mxu0 }
 0x3c5   : > { %v1682_v32 = vadd.f32 %v1677_v25, %v1662_v28  ;;  %v1641_v33 = vpop.f32.mrb[7].mxu0 }
 0x3c6   : > { %v1683_v44 = vadd.f32 %v1681_v27, %v1663_v30 }
 0x3c7   : > { %vm1684_vm11 = vcmp.gt.f32.partialorder %v1682_v32, 0.0  ;;  %v1686_v34 = vmul.f32 0.01, %v1682_v32 }
 0x3c8   : > { %v1687_v35 = vmul.f32 0.01, %v1683_v44  ;;  %vm1685_vm12 = vcmp.gt.f32.partialorder %v1683_v44, 0.0 }
 0x3c9   : > { %v1688_v45 = vsel %vm1684_vm11, %v1682_v32, %v1686_v34 }
 0x3ca   : > { %v1689_v36 = vsel %vm1685_vm12, %v1683_v44, %v1687_v35  ;;  %v1724_v39 = vpack.c.bf16 %v1688_v45, %v1688_v45 }
 0x3cb   : > { %v1725_v37 = vpack.c.bf16 %v1689_v36, %v1689_v36 }
 0x3cd   : > { %1854 = vmatprep.mubr.bf16.mxu1 %v1725_v37 }
 0x3ce   : > { %1855 = vmatmul.mubr.bf16.vlgmr.msra.gmra.mrb[12].mxu1 %v1724_v39 }
 0x3cf   : > { %2304 = vmatpush3.bf16.msra.mxu1 %v2588_v38  ;;  %2319 = vmatprep.mubr.msk.bf16.mxu1 %vm2623_vm2, %v2621_v1 }
 0x3d0   : > { %2305 = vmatprep.subr.bf16.mxu1 %v2621_v1 }
 0x3d3   : > { %2306 = vmatpush3.bf16.msra.mxu1 %v2589_v40 }
 0x3d4   : > { %2307 = vmatprep.subr.bf16.mxu1 %v2621_v1 }
 0x3d7   : > { %2308 = vmatpush3.bf16.msra.mxu1 %v2590_v41 }
 0x3d8   : > { %2309 = vmatprep.subr.bf16.mxu1 %v2621_v1 }
 0x3db   : > { %2310 = vmatpush3.bf16.msra.mxu1 %v2591_v42 }
 0x3dc   : > { %2311 = vmatprep.subr.bf16.mxu1 %v2621_v1 }
 0x3df   : > { %2312 = vmatpush3.bf16.msra.mxu1 %v2592_v43 }
 0x3e0   : > { %2313 = vmatprep.subr.bf16.mxu1 %v2621_v1 }
 0x3e3   : > { %2314 = vmatpush3.bf16.msra.mxu1 %v2593_v46 }
 0x3e4   : > { %2315 = vmatprep.subr.bf16.mxu1 %v2621_v1 }
 0x3e7   : > { %2316 = vmatpush3.bf16.msra.mxu1 %v2594_v47 }
 0x3e8   : > { %2317 = vmatprep.subr.bf16.mxu1 %v2621_v1 }
 0x3eb   : > { %2318 = vmatpush3.bf16.msra.mxu1 %v2595_v48 }
 0x4a1   : > { %v2282_v50 = vpop.f32.mrb[12].mxu1 }
 0x4a2   : > { %v2283_v52 = vpop.f32.mrb[13].mxu1 }
 0x4a3   : > { %v2284_v55 = vadd.f32 %v2283_v52, %v2282_v50  ;;  %v2285_v58 = vpop.f32.mrb[14].mxu1 }
 0x4a4   : > { %v2286_v59 = vpop.f32.mrb[15].mxu1 }
 0x4a5   : > { %v1866_v60 = vmul.f32 %v2284_v55, %v1865_v51 }
 0x4a7   : > { %v1871_v61 = vadd.f32 %v1870_v57, %v1866_v60 }
 0x4a9   : > { %vm1872_vm13 = vcmp.gt.f32.partialorder %v1871_v61, 0.0  ;;  %v1873_v1 = vmul.f32 0.01, %v1871_v61 }
 0x4ab   : > { %v1874_v62 = vsel %vm1872_vm13, %v1871_v61, %v1873_v1 }
 0x4ac   : > { %v1893_v63 = vpack.c.bf16 %v1874_v62, %v1874_v62 }
 0x4ae   : > { %2320 = vmatmul.mubr.bf16.vlgmr.msra.gmra.mrb[16].mxu1 %v1893_v63 }
 0x581   : > { %v1976_v4 = vpop.f32.mrb[16].mxu1 }
 0x582   : > { %v1986_v5 = vmul.f32 %v1985_v2, %v1976_v4  ;;  %v2321_v6 = vpop.f32.mrb[17].mxu1 }
 0x583   : > { %v1979_v7 = vpop.f32.mrb[18].mxu1 }
 0x584   : > { %v1991_v53 = vadd.f32 %v1990_v3, %v1986_v5  ;;  %v2322_v8 = vpop.f32.mrb[19].mxu1 }
 0x586   : > { %v1992_v10 = vadd.f32 %v2596_v9, %v1991_v53 }
 0x588   : > { %1993 = vst.msk [vmem:[%s351_s21] sm:$0xff] %vm357_vm3, %v1992_v10 }
 0x589 PF: > { %s18_s29 = sadd.s32 1, %s2619_s29   ;;  %s3314_s27 = smov %s2615_s28 }
 0x58a   : > { %p15_p5 = scmp.ge.s32.totalorder %s18_s29, 4   ;;  %s3315_s28 = smov %s3317_s30 }
 0x58c   :  { %17 = sbr.rel (!%p15_p5) target bundleno = 2 (0x2), region = 90 }

// kernel: _pointwise_net_impl.1
= control target key start
LH: loop header
LB: loop body
LE: loop exit
PB: predicated region body
PF: predicated region fallthrough
CT: control target
= control target key end

     0   :  { %s2670_s27 = smov 0   ;;  %s2672_s28 = smov 0   ;;  %s3305_s0 = inlined_call_operand.vmem [shape: f32[2,8,3], index: 0, kind: input, shape index: {}]   ;;  %s3306_s1 = inlined_call_operand.vmem [shape: bf16[3,128], index: 1, kind: input, shape index: {}]   ;;  %s3307_s2 = inlined_call_operand.vmem [shape: bf16[128,256], index: 2, kind: input, shape index: {}]   ;;  %s3308_s3 = inlined_call_operand.vmem [shape: bf16[256,512], index: 3, kind: input, shape index: {}]   ;;  %s3309_s4 = inlined_call_operand.vmem [shape: bf16[512,256], index: 4, kind: input, shape index: {}]   ;;  %s3310_s5 = inlined_call_operand.vmem [shape: bf16[256,128], index: 5, kind: input, shape index: {}]   ;;  %s3311_s6 = inlined_call_operand.vmem [shape: bf16[128,3], index: 6, kind: input, shape index: {}]   ;;  %s3312_s7 = inlined_call_operand.vmem [shape: f32[2,6,2,512], index: 7, kind: input, shape index: {}]   ;;  %s3313_s8 = inlined_call_operand.vmem [shape: f32[2,8,3], index: 8, kind: output, shape index: {}]  }
   0x1   :  { %s2674_s29 = smov 0  }
   0x2 LB: > { %s30_s30 = sadd.s32 1, %s2615_s28  ;;  %p2084_p0 = scmp.ge.s32.totalorder %s2619_s29, 1  ;;  %s2619_s29 = sphi %s2674_s29, %s18_s29   ;;  %s2615_s28 = sphi %s2672_s28, %s3315_s28   ;;  %s2611_s27 = sphi %s2670_s27, %s3314_s27  }
   0x3   : > { %p32_p1 = scmp.ge.s32.totalorder %s30_s30, 2  ;;  %p290_p2 = scmp.lt.s32.totalorder %s2619_s29, 3 }
   0x5   : > { %s3317_s30 = smov (%p32_p1, %s30_s30), 0  ;;  %p291_p3 = pnand %p2084_p0, %p290_p2 }
   0x6   : > { %v354_v0 = vld [vmem:[%s3306_s1] sm:$0x3] (!%p291_p3)  ;;  %vm361_vm0 = vcmask (!%p291_p3), 1040384   ;;  %vm362_vm1 = vcmask (!%p291_p3), 1041408   ;;  %v2621_v1 = vmov (!%p291_p3), 0.0   ;;  %v2622_v2 = vmov (!%p291_p3), 65535  }
   0x7   : > { %294 = sbr.rel (%p291_p3) target bundleno = 1417 (0x589), region = 52  ;;  %2297 = vmatprep.subr.bf16.mxu1 (!%p291_p3), %v2621_v1  ;;  %v363_v3 = vsel (!%p291_p3), %vm361_vm0, 4294967295, %v2622_v2  ;;  %p333_p4 = scmp.lt.s32.totalorder (!%p291_p3), %s2611_s27, 1  ;;  %vm2623_vm2 = vmmov (!%p291_p3), 0   ;;  %v2358_v5 = vld [vmem:[%s3307_s2 + $0x4] ss:$8 sps:$4 sm:$0xff] (!%p291_p3)   ;;  %v408_v52 = vlaneseq (!%p291_p3) }
   0x8   : > { %v364_v4 = vsel (!%p291_p3), %vm362_vm1, %v363_v3, 0  ;;  %2299 = vmatprep.mubr.msk.bf16.mxu1 (!%p291_p3), %vm2623_vm2, %v2621_v1  ;;  %vm357_vm3 = vcmask (!%p291_p3), 23552   ;;  %v2356_v8 = vld [vmem:[%s3307_s2] ss:$8 sps:$4 sm:$0xff] (!%p291_p3)   ;;  %v2361_v10 = vld [vmem:[%s3307_s2 + $0x14] ss:$8 sps:$4 sm:$0xff] (!%p291_p3)  }
   0x9   : > { %v366_v6 = vand.u32 (!%p291_p3), %v364_v4, %v354_v0  ;;  %v2359_v11 = vld [vmem:[%s3307_s2 + $0x10] ss:$8 sps:$4 sm:$0xff] (!%p291_p3)   ;;  %v2364_v12 = vld [vmem:[%s3307_s2 + $0x24] ss:$8 sps:$4 sm:$0xff] (!%p291_p3)   ;;  %v2362_v13 = vld [vmem:[%s3307_s2 + $0x20] ss:$8 sps:$4 sm:$0xff] (!%p291_p3)  }
   0xa   : > { %v2367_v14 = vld [vmem:[%s3307_s2 + $0x34] ss:$8 sps:$4 sm:$0xff] (!%p291_p3)   ;;  %v2365_v15 = vld [vmem:[%s3307_s2 + $0x30] ss:$8 sps:$4 sm:$0xff] (!%p291_p3)   ;;  %v2370_v16 = vld [vmem:[%s3307_s2 + $0x44] ss:$8 sps:$4 sm:$0xff] (!%p291_p3)  }
   0xb   : > { %2298 = vmatpush3.bf16.msra.mxu1 (!%p291_p3), %v366_v6  ;;  %v2368_v17 = vld [vmem:[%s3307_s2 + $0x40] ss:$8 sps:$4 sm:$0xff] (!%p291_p3)   ;;  %v2373_v18 = vld [vmem:[%s3307_s2 + $0x54] ss:$8 sps:$4 sm:$0xff] (!%p291_p3)   ;;  %v2371_v19 = vld [vmem:[%s3307_s2 + $0x50] ss:$8 sps:$4 sm:$0xff] (!%p291_p3)  }
   0xc   : > { %520 = vmatprep.subr.bf16.mxu1 (!%p291_p3), %v2358_v5  ;;  %v2376_v20 = vld [vmem:[%s3307_s2 + $0x64] ss:$8 sps:$4 sm:$0xff] (!%p291_p3)   ;;  %v2374_v21 = vld [vmem:[%s3307_s2 + $0x60] ss:$8 sps:$4 sm:$0xff] (!%p291_p3)   ;;  %v2379_v22 = vld [vmem:[%s3307_s2 + $0x74] ss:$8 sps:$4 sm:$0xff] (!%p291_p3)  }
   0xd   : > { %v2377_v23 = vld [vmem:[%s3307_s2 + $0x70] ss:$8 sps:$4 sm:$0xff] (!%p291_p3)   ;;  %v2624_v24 = vmov (!%p291_p3), 0   ;;  %v2380_v25 = vld [vmem:[%s3308_s3 + $0x4] ss:$16 sps:$4 sm:$0xff] (!%p291_p3)   ;;  %v2836_v53 = vshrl.u32 (!%p291_p3), %v408_v52, 7 }
   0xe   : > { %s3319_s27 = smov (!%p333_p4, %s2611_s27), 1  ;;  %v2384_v26 = vld [vmem:[%s3308_s3 + $0xc] ss:$16 sps:$4 sm:$0xff]   ;;  %v2385_v27 = vld [vmem:[%s3308_s3] ss:$16 sps:$4 sm:$0xff]   ;;  %996 = vmatprep.subr.bf16.mxu0 %v2380_v25 }
   0xf   : > { %s2085_s13 = sshll.u32 %s3319_s27, 3  ;;  %v2386_v28 = vld [vmem:[%s3308_s3 + $0x24] ss:$16 sps:$4 sm:$0xff]   ;;  %997 = vmatpush1.bf16.msra.mxu0 %v2385_v27  ;;  %v2391_v29 = vld [vmem:[%s3308_s3 + $0x20] ss:$16 sps:$4 sm:$0xff]   ;;  %s2327_s21 = smul.u32 48, %s3319_s27 }
  0x10   : > { %s2705_s16 = scalar_lea.vmem %s3305_s0, %s2085_s13  ;;  %998 = vmatprep.subr.bf16.mxu0 %v2386_v28  ;;  %v2392_v30 = vld [vmem:[%s3308_s3 + $0x44] ss:$16 sps:$4 sm:$0xff]   ;;  %v2397_v31 = vld [vmem:[%s3308_s3 + $0x40] ss:$16 sps:$4 sm:$0xff]   ;;  %v2844_v54 = vsub.s32 0, %v2836_v53  ;;  %v2848_v56 = vsub.s32 1, %v2836_v53 }
  0x11   : > { %v353_v7 = vld [vmem:[%s2705_s16] sm:$0xff]  ;;  %s2841_s24 = scalar_lea.vmem %s3312_s7, %s2327_s21  ;;  %v2382_v4 = vld [vmem:[%s3308_s3 + $0x8] ss:$16 sps:$4 sm:$0xff]   ;;  %v2390_v6 = vld [vmem:[%s3308_s3 + $0x2c] ss:$16 sps:$4 sm:$0xff]   ;;  %s351_s21 = scalar_lea.vmem %s3313_s8, %s2085_s13 }
  0x12   : > { %v356_v9 = vpack.c.bf16 %v353_v7, %v353_v7  ;;  %v2398_v32 = vld [vmem:[%s3308_s3 + $0x64] ss:$16 sps:$4 sm:$0xff]   ;;  %v2403_v33 = vld [vmem:[%s3308_s3 + $0x60] ss:$16 sps:$4 sm:$0xff]   ;;  %v2388_v7 = vld [vmem:[%s3308_s3 + $0x28] ss:$16 sps:$4 sm:$0xff]  }
  0x13   : > { %999 = vmatpush1.bf16.msra.mxu0 %v2391_v29  ;;  %v2404_v34 = vld [vmem:[%s3308_s3 + $0x84] ss:$16 sps:$4 sm:$0xff]   ;;  %v2409_v35 = vld [vmem:[%s3308_s3 + $0x80] ss:$16 sps:$4 sm:$0xff]   ;;  %v2442_v25 = vld [vmem:[%s3308_s3 + $0x148] ss:$16 sps:$4 sm:$0xff]  }
  0x14   : > { %2300 = vmatmul.mubr.msk.bf16.vlgmr.msra.gmra.mrb[0].mxu1 %vm357_vm3, %v356_v9  ;;  %1000 = vmatprep.subr.bf16.mxu0 %v2392_v30  ;;  %v2410_v36 = vld [vmem:[%s3308_s3 + $0xa4] ss:$16 sps:$4 sm:$0xff]   ;;  %v2415_v37 = vld [vmem:[%s3308_s3 + $0xa0] ss:$16 sps:$4 sm:$0xff]   ;;  %v2394_v9 = vld [vmem:[%s3308_s3 + $0x48] ss:$16 sps:$4 sm:$0xff]  }
  0x15   : > { %521 = vmatpush1.bf16.msra.mxu1 %v2356_v8  ;;  %552 = vmatprep.mubr.bf16.mxu1 %v2624_v24  ;;  %v2416_v38 = vld [vmem:[%s3308_s3 + $0xc4] ss:$16 sps:$4 sm:$0xff]   ;;  %v2421_v39 = vld [vmem:[%s3308_s3 + $0xc0] ss:$16 sps:$4 sm:$0xff]   ;;  %v2396_v8 = vld [vmem:[%s3308_s3 + $0x4c] ss:$16 sps:$4 sm:$0xff]  }
  0x16   : > { %522 = vmatprep.subr.bf16.mxu1 %v2361_v10  ;;  %v2422_v40 = vld [vmem:[%s3308_s3 + $0xe4] ss:$16 sps:$4 sm:$0xff]   ;;  %v2427_v41 = vld [vmem:[%s3308_s3 + $0xe0] ss:$16 sps:$4 sm:$0xff]   ;;  %v2402_v10 = vld [vmem:[%s3308_s3 + $0x6c] ss:$16 sps:$4 sm:$0xff]  }
  0x17   : > { %1001 = vmatpush1.bf16.msra.mxu0 %v2397_v31  ;;  %v2428_v42 = vld [vmem:[%s3308_s3 + $0x104] ss:$16 sps:$4 sm:$0xff]   ;;  %v2433_v43 = vld [vmem:[%s3308_s3 + $0x100] ss:$16 sps:$4 sm:$0xff]   ;;  %v2444_v24 = vld [vmem:[%s3308_s3 + $0x14c] ss:$16 sps:$4 sm:$0xff]  }
  0x18   : > { %1002 = vmatprep.subr.bf16.mxu0 %v2398_v32  ;;  %v2434_v44 = vld [vmem:[%s3308_s3 + $0x124] ss:$16 sps:$4 sm:$0xff]   ;;  %v2439_v45 = vld [vmem:[%s3308_s3 + $0x120] ss:$16 sps:$4 sm:$0xff]   ;;  %v2448_v27 = vld [vmem:[%s3308_s3 + $0x168] ss:$16 sps:$4 sm:$0xff]  }
  0x19   : > { %523 = vmatpush1.bf16.msra.mxu1 %v2359_v11  ;;  %v2440_v46 = vld [vmem:[%s3308_s3 + $0x144] ss:$16 sps:$4 sm:$0xff]   ;;  %v2445_v47 = vld [vmem:[%s3308_s3 + $0x140] ss:$16 sps:$4 sm:$0xff]   ;;  %v2400_v11 = vld [vmem:[%s3308_s3 + $0x68] ss:$16 sps:$4 sm:$0xff]  }
  0x1a   : > { %524 = vmatprep.subr.bf16.mxu1 %v2364_v12  ;;  %v2446_v48 = vld [vmem:[%s3308_s3 + $0x164] ss:$16 sps:$4 sm:$0xff]   ;;  %v2451_v49 = vld [vmem:[%s3308_s3 + $0x160] ss:$16 sps:$4 sm:$0xff]   ;;  %v2408_v12 = vld [vmem:[%s3308_s3 + $0x8c] ss:$16 sps:$4 sm:$0xff]  }
  0x1b   : > { %1003 = vmatpush1.bf16.msra.mxu0 %v2403_v33  ;;  %v2452_v50 = vld [vmem:[%s3308_s3 + $0x184] ss:$16 sps:$4 sm:$0xff]   ;;  %v2457_v51 = vld [vmem:[%s3308_s3 + $0x180] ss:$16 sps:$4 sm:$0xff]   ;;  %v2456_v28 = vld [vmem:[%s3308_s3 + $0x18c] ss:$16 sps:$4 sm:$0xff]  }
  0x1c   : > { %1004 = vmatprep.subr.bf16.mxu0 %v2404_v34  ;;  %v355_v55 = vld [vmem:[%s2841_s24] sm:$0xff]  ;;  %v2454_v29 = vld [vmem:[%s3308_s3 + $0x188] ss:$16 sps:$4 sm:$0xff]   ;;  %v2462_v31 = vld [vmem:[%s3308_s3 + $0x1ac] ss:$16 sps:$4 sm:$0xff]  }
  0x1d   : > { %525 = vmatpush1.bf16.msra.mxu1 %v2362_v13  ;;  %v411_v57 = vrot.slane %v355_v55, %v2844_v54  ;;  %v416_v58 = vrot.slane %v355_v55, %v2848_v56  ;;  %v2406_v13 = vld [vmem:[%s3308_s3 + $0x88] ss:$16 sps:$4 sm:$0xff]   ;;  %v2458_v30 = vld [vmem:[%s3308_s3 + $0x1a4] ss:$16 sps:$4 sm:$0xff]   ;;  %v2463_v33 = vld [vmem:[%s3308_s3 + $0x1a0] ss:$16 sps:$4 sm:$0xff]  }
  0x1e   : > { %526 = vmatprep.subr.bf16.mxu1 %v2367_v14  ;;  %v2414_v14 = vld [vmem:[%s3308_s3 + $0xac] ss:$16 sps:$4 sm:$0xff]   ;;  %v2460_v32 = vld [vmem:[%s3308_s3 + $0x1a8] ss:$16 sps:$4 sm:$0xff]   ;;  %v2464_v34 = vld [vmem:[%s3308_s3 + $0x1c4] ss:$16 sps:$4 sm:$0xff]  }
  0x1f   : > { %1005 = vmatpush1.bf16.msra.mxu0 %v2409_v35  ;;  %v2468_v35 = vld [vmem:[%s3308_s3 + $0x1cc] ss:$16 sps:$4 sm:$0xff]  }
  0x20   : > { %1006 = vmatprep.subr.bf16.mxu0 %v2410_v36  ;;  %v2466_v36 = vld [vmem:[%s3308_s3 + $0x1c8] ss:$16 sps:$4 sm:$0xff]  }
  0x21   : > { %527 = vmatpush1.bf16.msra.mxu1 %v2365_v15  ;;  %v2412_v15 = vld [vmem:[%s3308_s3 + $0xa8] ss:$16 sps:$4 sm:$0xff]  }
  0x22   : > { %528 = vmatprep.subr.bf16.mxu1 %v2370_v16  ;;  %v2420_v16 = vld [vmem:[%s3308_s3 + $0xcc] ss:$16 sps:$4 sm:$0xff]  }
  0x23   : > { %1007 = vmatpush1.bf16.msra.mxu0 %v2415_v37  ;;  %v2469_v37 = vld [vmem:[%s3308_s3 + $0x1c0] ss:$16 sps:$4 sm:$0xff]  }
  0x24   : > { %1008 = vmatprep.subr.bf16.mxu0 %v2416_v38  ;;  %v2470_v38 = vld [vmem:[%s3308_s3 + $0x1e4] ss:$16 sps:$4 sm:$0xff]  }
  0x25   : > { %529 = vmatpush1.bf16.msra.mxu1 %v2368_v17  ;;  %v2418_v17 = vld [vmem:[%s3308_s3 + $0xc8] ss:$16 sps:$4 sm:$0xff]  }
  0x26   : > { %530 = vmatprep.subr.bf16.mxu1 %v2373_v18  ;;  %v2426_v18 = vld [vmem:[%s3308_s3 + $0xec] ss:$16 sps:$4 sm:$0xff]  }
  0x27   : > { %1009 = vmatpush1.bf16.msra.mxu0 %v2421_v39  ;;  %v2472_v39 = vld [vmem:[%s3308_s3 + $0x1e8] ss:$16 sps:$4 sm:$0xff]  }
  0x28   : > { %1010 = vmatprep.subr.bf16.mxu0 %v2422_v40  ;;  %v2474_v40 = vld [vmem:[%s3308_s3 + $0x1ec] ss:$16 sps:$4 sm:$0xff]  }
  0x29   : > { %531 = vmatpush1.bf16.msra.mxu1 %v2371_v19  ;;  %v2424_v19 = vld [vmem:[%s3308_s3 + $0xe8] ss:$16 sps:$4 sm:$0xff]  }
  0x2a   : > { %532 = vmatprep.subr.bf16.mxu1 %v2376_v20  ;;  %v2432_v20 = vld [vmem:[%s3308_s3 + $0x10c] ss:$16 sps:$4 sm:$0xff]  }
  0x2b   : > { %1011 = vmatpush1.bf16.msra.mxu0 %v2427_v41  ;;  %v2475_v41 = vld [vmem:[%s3308_s3 + $0x1e0] ss:$16 sps:$4 sm:$0xff]  }
  0x2c   : > { %1012 = vmatprep.subr.bf16.mxu0 %v2428_v42  ;;  %v2478_v42 = vld [vmem:[%s3309_s4 + $0x4] ss:$8 sps:$4 sm:$0xff]  }
  0x2d   : > { %533 = vmatpush1.bf16.msra.mxu1 %v2374_v21  ;;  %v2430_v21 = vld [vmem:[%s3308_s3 + $0x108] ss:$16 sps:$4 sm:$0xff]  }
  0x2e   : > { %534 = vmatprep.subr.bf16.mxu1 %v2379_v22  ;;  %v2438_v22 = vld [vmem:[%s3308_s3 + $0x12c] ss:$16 sps:$4 sm:$0xff]  }
  0x2f   : > { %1013 = vmatpush1.bf16.msra.mxu0 %v2433_v43  ;;  %v2089_v43 = vld [vmem:[%s2841_s24 + $0x8] sm:$0xff] }
  0x30   : > { %1014 = vmatprep.subr.bf16.mxu0 %v2434_v44  ;;  %v2968_v44 = vsub.s32 2, %v2836_v53 }
  0x31   : > { %535 = vmatpush1.bf16.msra.mxu1 %v2377_v23  ;;  %v2436_v23 = vld [vmem:[%s3308_s3 + $0x128] ss:$16 sps:$4 sm:$0xff]  }
  0x32   : > { %1037 = vmatprep.subr.bf16.mxu1 %v2384_v26  ;;  %v2450_v26 = vld [vmem:[%s3308_s3 + $0x16c] ss:$16 sps:$4 sm:$0xff]  }
  0x33   : > { %1015 = vmatpush1.bf16.msra.mxu0 %v2439_v45  ;;  %v2971_v45 = vsub.s32 3, %v2836_v53 }
  0x34   : > { %1016 = vmatprep.subr.bf16.mxu0 %v2440_v46  ;;  %v565_v46 = vrot.slane %v2089_v43, %v2844_v54 }
  0x37   : > { %1017 = vmatpush1.bf16.msra.mxu0 %v2445_v47  ;;  %v569_v47 = vrot.slane %v2089_v43, %v2968_v44 }
  0x38   : > { %1018 = vmatprep.subr.bf16.mxu0 %v2446_v48  ;;  %v585_v48 = vrot.slane %v2089_v43, %v2848_v56 }
  0x3a   : > { %v595_v52 = vrot.slane %v585_v48, %v2848_v56  ;;  %v2578_v48 = vld [vmem:[%s3310_s5 + $0x58] sm:$0xff]  }
  0x3b   : > { %1019 = vmatpush1.bf16.msra.mxu0 %v2451_v49  ;;  %v589_v49 = vrot.slane %v2089_v43, %v2971_v45  ;;  %v2575_v43 = vld [vmem:[%s3310_s5 + $0x8] sm:$0xff]  }
  0x3c   : > { %1020 = vmatprep.subr.bf16.mxu0 %v2452_v50  ;;  %v575_v50 = vrot.slane %v565_v46, %v2844_v54  ;;  %v2576_v46 = vld [vmem:[%s3310_s5 + $0x50] sm:$0xff]  }
  0x3f   : > { %1021 = vmatpush1.bf16.msra.mxu0 %v2457_v51  ;;  %v579_v51 = vrot.slane %v569_v47, %v2844_v54  ;;  %v2577_v47 = vld [vmem:[%s3310_s5 + $0x10] sm:$0xff]  }
  0x40   : > { %1022 = vmatprep.subr.bf16.mxu0 %v2458_v30  ;;  %v2509_v30 = vld [vmem:[%s3309_s4 + $0xb0] ss:$8 sps:$4 sm:$0xff]  }
  0x43   : > { %1023 = vmatpush1.bf16.msra.mxu0 %v2463_v33  ;;  %v2517_v33 = vld [vmem:[%s3309_s4 + $0xd4] ss:$8 sps:$4 sm:$0xff]  }
  0x44   : > { %1024 = vmatprep.subr.bf16.mxu0 %v2464_v34  ;;  %v2515_v34 = vld [vmem:[%s3309_s4 + $0xd0] ss:$8 sps:$4 sm:$0xff]  }
  0x47   : > { %1025 = vmatpush1.bf16.msra.mxu0 %v2469_v37  ;;  %v2523_v37 = vld [vmem:[%s3309_s4 + $0xf4] ss:$8 sps:$4 sm:$0xff]  }
  0x48   : > { %1026 = vmatprep.subr.bf16.mxu0 %v2470_v38  ;;  %v2521_v38 = vld [vmem:[%s3309_s4 + $0xf0] ss:$8 sps:$4 sm:$0xff]  }
  0x4b   : > { %1027 = vmatpush1.bf16.msra.mxu0 %v2475_v41  ;;  %v2573_v41 = vld [vmem:[%s3310_s5] sm:$0xff]  }
  0x4c   : > { %1561 = vmatprep.subr.bf16.mxu0 %v2478_v42  ;;  %v2574_v42 = vld [vmem:[%s3310_s5 + $0x48] sm:$0xff]  }
  0xe7   : > { %v402_v59 = vpop.f32.mrb[0].mxu1 }
  0xe8   : > { %v412_v60 = vmul.f32 %v411_v57, %v402_v59  ;;  %v2301_v61 = vpop.f32.mrb[1].mxu1  ;;  %v599_v57 = vrot.slane %v589_v49, %v2848_v56  ;;  %v2579_v49 = vld [vmem:[%s3310_s5 + $0x18] sm:$0xff]  }
  0xe9   : > { %v405_v62 = vpop.f32.mrb[2].mxu1 }
  0xea   : > { %v417_v63 = vadd.f32 %v416_v58, %v412_v60  ;;  %v2302_v0 = vpop.f32.mrb[3].mxu1 }
  0xec   : > { %vm418_vm4 = vcmp.gt.f32.partialorder %v417_v63, 0.0  ;;  %v419_v2 = vmul.f32 0.01, %v417_v63 }
  0xee   : > { %v420_v3 = vsel %vm418_vm4, %v417_v63, %v419_v2 }
  0xef   : > { %v439_v5 = vpack.c.bf16 %v420_v3, %v420_v3 }
  0xf1   : > { %553 = vmatmul.mubr.bf16.vlgmr.msra.gmra.mrb[4].mxu1 %v439_v5 }
  0xf2   : > { %1038 = vmatpush1.bf16.msra.mxu1 %v2382_v4 }
  0xf3   : > { %1039 = vmatprep.subr.bf16.mxu1 %v2390_v6 }
  0xf6   : > { %1040 = vmatpush1.bf16.msra.mxu1 %v2388_v7  ;;  %v2476_v7 = vld [vmem:[%s3309_s4] ss:$8 sps:$4 sm:$0xff]  }
  0xf7   : > { %1041 = vmatprep.subr.bf16.mxu1 %v2396_v8 }
  0xfa   : > { %1042 = vmatpush1.bf16.msra.mxu1 %v2394_v9  ;;  %v2481_v9 = vld [vmem:[%s3309_s4 + $0x14] ss:$8 sps:$4 sm:$0xff]  }
  0xfb   : > { %1043 = vmatprep.subr.bf16.mxu1 %v2402_v10  ;;  %v2479_v10 = vld [vmem:[%s3309_s4 + $0x10] ss:$8 sps:$4 sm:$0xff]  }
  0xfe   : > { %1044 = vmatpush1.bf16.msra.mxu1 %v2400_v11  ;;  %v2484_v11 = vld [vmem:[%s3309_s4 + $0x24] ss:$8 sps:$4 sm:$0xff]  }
  0xff   : > { %1045 = vmatprep.subr.bf16.mxu1 %v2408_v12  ;;  %v2482_v12 = vld [vmem:[%s3309_s4 + $0x20] ss:$8 sps:$4 sm:$0xff]  }
 0x102   : > { %1046 = vmatpush1.bf16.msra.mxu1 %v2406_v13  ;;  %v2487_v13 = vld [vmem:[%s3309_s4 + $0x34] ss:$8 sps:$4 sm:$0xff]  }
 0x103   : > { %1047 = vmatprep.subr.bf16.mxu1 %v2414_v14  ;;  %v2485_v14 = vld [vmem:[%s3309_s4 + $0x30] ss:$8 sps:$4 sm:$0xff]  }
 0x106   : > { %1048 = vmatpush1.bf16.msra.mxu1 %v2412_v15  ;;  %v2490_v15 = vld [vmem:[%s3309_s4 + $0x44] ss:$8 sps:$4 sm:$0xff]  }
 0x107   : > { %1049 = vmatprep.subr.bf16.mxu1 %v2420_v16  ;;  %v2488_v16 = vld [vmem:[%s3309_s4 + $0x40] ss:$8 sps:$4 sm:$0xff]  }
 0x10a   : > { %1050 = vmatpush1.bf16.msra.mxu1 %v2418_v17  ;;  %v2493_v17 = vld [vmem:[%s3309_s4 + $0x54] ss:$8 sps:$4 sm:$0xff]  }
 0x10b   : > { %1051 = vmatprep.subr.bf16.mxu1 %v2426_v18  ;;  %v2491_v18 = vld [vmem:[%s3309_s4 + $0x50] ss:$8 sps:$4 sm:$0xff]  }
 0x10e   : > { %1052 = vmatpush1.bf16.msra.mxu1 %v2424_v19  ;;  %v2496_v19 = vld [vmem:[%s3309_s4 + $0x64] ss:$8 sps:$4 sm:$0xff]  }
 0x10f   : > { %1053 = vmatprep.subr.bf16.mxu1 %v2432_v20  ;;  %v2494_v20 = vld [vmem:[%s3309_s4 + $0x60] ss:$8 sps:$4 sm:$0xff]  }
 0x112   : > { %1054 = vmatpush1.bf16.msra.mxu1 %v2430_v21  ;;  %v2499_v21 = vld [vmem:[%s3309_s4 + $0x74] ss:$8 sps:$4 sm:$0xff]  }
 0x113   : > { %1055 = vmatprep.subr.bf16.mxu1 %v2438_v22  ;;  %v2497_v22 = vld [vmem:[%s3309_s4 + $0x70] ss:$8 sps:$4 sm:$0xff]  }
 0x116   : > { %1056 = vmatpush1.bf16.msra.mxu1 %v2436_v23  ;;  %v2502_v23 = vld [vmem:[%s3309_s4 + $0x84] ss:$8 sps:$4 sm:$0xff]  }
 0x117   : > { %1057 = vmatprep.subr.bf16.mxu1 %v2444_v24  ;;  %v2500_v24 = vld [vmem:[%s3309_s4 + $0x80] ss:$8 sps:$4 sm:$0xff]  }
 0x11a   : > { %1058 = vmatpush1.bf16.msra.mxu1 %v2442_v25  ;;  %v2505_v25 = vld [vmem:[%s3309_s4 + $0x94] ss:$8 sps:$4 sm:$0xff]  }
 0x11b   : > { %1059 = vmatprep.subr.bf16.mxu1 %v2450_v26  ;;  %v2503_v26 = vld [vmem:[%s3309_s4 + $0x90] ss:$8 sps:$4 sm:$0xff]  }
 0x11e   : > { %1060 = vmatpush1.bf16.msra.mxu1 %v2448_v27  ;;  %v2508_v27 = vld [vmem:[%s3309_s4 + $0xa4] ss:$8 sps:$4 sm:$0xff]  }
 0x11f   : > { %1061 = vmatprep.subr.bf16.mxu1 %v2456_v28  ;;  %v2506_v28 = vld [vmem:[%s3309_s4 + $0xa0] ss:$8 sps:$4 sm:$0xff]  }
 0x122   : > { %1062 = vmatpush1.bf16.msra.mxu1 %v2454_v29  ;;  %v2511_v29 = vld [vmem:[%s3309_s4 + $0xb4] ss:$8 sps:$4 sm:$0xff]  }
 0x123   : > { %1063 = vmatprep.subr.bf16.mxu1 %v2462_v31  ;;  %v2514_v31 = vld [vmem:[%s3309_s4 + $0xc4] ss:$8 sps:$4 sm:$0xff]  }
 0x126   : > { %1064 = vmatpush1.bf16.msra.mxu1 %v2460_v32  ;;  %v2512_v32 = vld [vmem:[%s3309_s4 + $0xc0] ss:$8 sps:$4 sm:$0xff]  }
 0x127   : > { %1065 = vmatprep.subr.bf16.mxu1 %v2468_v35  ;;  %v2520_v35 = vld [vmem:[%s3309_s4 + $0xe4] ss:$8 sps:$4 sm:$0xff]  }
 0x12a   : > { %1066 = vmatpush1.bf16.msra.mxu1 %v2466_v36  ;;  %v2518_v36 = vld [vmem:[%s3309_s4 + $0xe0] ss:$8 sps:$4 sm:$0xff]  }
 0x12b   : > { %1067 = vmatprep.subr.bf16.mxu1 %v2474_v40  ;;  %v2572_v40 = vld [vmem:[%s3310_s5 + $0x40] sm:$0xff]  }
 0x12e   : > { %1068 = vmatpush1.bf16.msra.mxu1 %v2472_v39  ;;  %v2526_v39 = vld [vmem:[%s3309_s4 + $0x104] ss:$8 sps:$4 sm:$0xff]  }
 0x12f   : > { %2266 = vmatprep.subr.bf16.mxu1 %v2572_v40  ;;  %v2532_v40 = vld [vmem:[%s3309_s4 + $0x124] ss:$8 sps:$4 sm:$0xff]  }
 0x1c4   : > { %v554_v55 = vpop.f32.mrb[4].mxu1 }
 0x1c5   : > { %v580_v58 = vmul.f32 %v575_v50, %v554_v55  ;;  %v556_v59 = vpop.f32.mrb[5].mxu1  ;;  %v2580_v50 = vld [vmem:[%s3310_s5 + $0x60] sm:$0xff]   ;;  %v2106_v55 = vld [vmem:[%s2841_s24 + $0x10] sm:$0xff] }
 0x1c6   : > { %v581_v60 = vmul.f32 %v579_v51, %v556_v59  ;;  %v558_v61 = vpop.f32.mrb[6].mxu1  ;;  %v2581_v51 = vld [vmem:[%s3310_s5 + $0x20] sm:$0xff]   ;;  %v1133_v59 = vsub.s32 7, %v2836_v53 }
 0x1c7   : > { %v600_v62 = vadd.f32 %v595_v52, %v580_v58  ;;  %v559_v63 = vpop.f32.mrb[7].mxu1  ;;  %v1089_v52 = vsub.s32 4, %v2836_v53  ;;  %v1129_v58 = vsub.s32 5, %v2836_v53 }
 0x1c8   : > { %v601_v0 = vadd.f32 %v599_v57, %v581_v60  ;;  %v1093_v57 = vsub.s32 6, %v2836_v53  ;;  %v1082_v60 = vrot.slane %v2106_v55, %v2844_v54 }
 0x1c9   : > { %v604_v2 = vmul.f32 0.01, %v600_v62  ;;  %vm602_vm5 = vcmp.gt.f32.partialorder %v600_v62, 0.0  ;;  %v1090_v61 = vrot.slane %v2106_v55, %v1089_v52  ;;  %v2547_v52 = vld [vmem:[%s3309_s4 + $0x174] ss:$8 sps:$4 sm:$0xff]  }
 0x1ca   : > { %vm603_vm6 = vcmp.gt.f32.partialorder %v601_v0, 0.0  ;;  %v605_v3 = vmul.f32 0.01, %v601_v0  ;;  %v1094_v63 = vrot.slane %v2106_v55, %v1093_v57  ;;  %v2550_v57 = vld [vmem:[%s3309_s4 + $0x184] ss:$8 sps:$4 sm:$0xff]  }
 0x1cb   : > { %v606_v4 = vsel %vm602_vm5, %v600_v62, %v604_v2  ;;  %v1086_v62 = vrot.slane %v2106_v55, %v2968_v44  ;;  %v1130_v2 = vrot.slane %v2106_v55, %v1129_v58  ;;  %v2548_v58 = vld [vmem:[%s3309_s4 + $0x180] ss:$8 sps:$4 sm:$0xff]  }
 0x1cc   : > { %v607_v5 = vsel %vm603_vm6, %v601_v0, %v605_v3  ;;  %v674_v8 = vpack.c.bf16 %v606_v4, %v606_v4  ;;  %v1122_v0 = vrot.slane %v2106_v55, %v2848_v56  ;;  %v1126_v3 = vrot.slane %v2106_v55, %v2971_v45 }
 0x1cd   : > { %v675_v6 = vpack.c.bf16 %v607_v5, %v607_v5  ;;  %v1134_v4 = vrot.slane %v2106_v55, %v1133_v59  ;;  %v1102_v5 = vrot.slane %v1082_v60, %v2844_v54  ;;  %v1114_v53 = vrot.slane %v1094_v63, %v2844_v54  ;;  %v2545_v55 = vld [vmem:[%s3309_s4 + $0x170] ss:$8 sps:$4 sm:$0xff]   ;;  %v2553_v59 = vld [vmem:[%s3309_s4 + $0x194] ss:$8 sps:$4 sm:$0xff]  }
 0x1ce   : > { %v2551_v60 = vld [vmem:[%s3309_s4 + $0x190] ss:$8 sps:$4 sm:$0xff]   ;;  %v2559_v63 = vld [vmem:[%s3309_s4 + $0x1b4] ss:$8 sps:$4 sm:$0xff]  }
 0x1cf   : > { %1028 = vmatprep.mubr.bf16.mxu0 %v675_v6  ;;  %1069 = vmatprep.mubr.bf16.mxu1 %v675_v6  ;;  %v1110_v6 = vrot.slane %v1090_v61, %v2844_v54  ;;  %v2556_v61 = vld [vmem:[%s3309_s4 + $0x1a4] ss:$8 sps:$4 sm:$0xff]  }
 0x1d0   : > { %1029 = vmatmul.mubr.bf16.vlgmr.msra.gmra.mrb[0].mxu0 %v674_v8  ;;  %1070 = vmatmul.mubr.bf16.vlgmr.msra.gmra.mrb[8].mxu1 %v674_v8  ;;  %v1142_v8 = vrot.slane %v1122_v0, %v2848_v56  ;;  %v2557_v0 = vld [vmem:[%s3309_s4 + $0x1b0] ss:$8 sps:$4 sm:$0xff]  }
 0x1d1   : > { %1562 = vmatpush1.bf16.msra.mxu0 %v2476_v7  ;;  %2267 = vmatpush3.bf16.msra.mxu1 %v2573_v41  ;;  %v1106_v7 = vrot.slane %v1086_v62, %v2844_v54  ;;  %v2530_v41 = vld [vmem:[%s3309_s4 + $0x120] ss:$8 sps:$4 sm:$0xff]  }
 0x1d2   : > { %1563 = vmatprep.subr.bf16.mxu0 %v2481_v9  ;;  %2268 = vmatprep.subr.bf16.mxu1 %v2574_v42  ;;  %v1150_v9 = vrot.slane %v1130_v2, %v2848_v56  ;;  %v2535_v42 = vld [vmem:[%s3309_s4 + $0x134] ss:$8 sps:$4 sm:$0xff]   ;;  %v2554_v62 = vld [vmem:[%s3309_s4 + $0x1a0] ss:$8 sps:$4 sm:$0xff]   ;;  %v2562_v2 = vld [vmem:[%s3309_s4 + $0x1c4] ss:$8 sps:$4 sm:$0xff]  }
 0x1d5   : > { %1564 = vmatpush1.bf16.msra.mxu0 %v2479_v10  ;;  %2269 = vmatpush3.bf16.msra.mxu1 %v2575_v43  ;;  %v2533_v43 = vld [vmem:[%s3309_s4 + $0x130] ss:$8 sps:$4 sm:$0xff]  }
 0x1d6   : > { %1565 = vmatprep.subr.bf16.mxu0 %v2484_v11  ;;  %2270 = vmatprep.subr.bf16.mxu1 %v2576_v46  ;;  %v2538_v46 = vld [vmem:[%s3309_s4 + $0x144] ss:$8 sps:$4 sm:$0xff]  }
 0x1d9   : > { %1566 = vmatpush1.bf16.msra.mxu0 %v2482_v12  ;;  %2271 = vmatpush3.bf16.msra.mxu1 %v2577_v47  ;;  %v1146_v12 = vrot.slane %v1126_v3, %v2848_v56  ;;  %v2536_v47 = vld [vmem:[%s3309_s4 + $0x140] ss:$8 sps:$4 sm:$0xff]  }
 0x1da   : > { %1567 = vmatprep.subr.bf16.mxu0 %v2487_v13  ;;  %2272 = vmatprep.subr.bf16.mxu1 %v2578_v48  ;;  %v1154_v13 = vrot.slane %v1134_v4, %v2848_v56  ;;  %v2541_v48 = vld [vmem:[%s3309_s4 + $0x154] ss:$8 sps:$4 sm:$0xff]   ;;  %v2560_v3 = vld [vmem:[%s3309_s4 + $0x1c0] ss:$8 sps:$4 sm:$0xff]  }
 0x1db   : > { %v2565_v4 = vld [vmem:[%s3309_s4 + $0x1d4] ss:$8 sps:$4 sm:$0xff]  }
 0x1dd   : > { %1568 = vmatpush1.bf16.msra.mxu0 %v2485_v14  ;;  %2273 = vmatpush3.bf16.msra.mxu1 %v2579_v49  ;;  %v2539_v49 = vld [vmem:[%s3309_s4 + $0x150] ss:$8 sps:$4 sm:$0xff]  }
 0x1de   : > { %1569 = vmatprep.subr.bf16.mxu0 %v2490_v15  ;;  %2274 = vmatprep.subr.bf16.mxu1 %v2580_v50  ;;  %v2544_v50 = vld [vmem:[%s3309_s4 + $0x164] ss:$8 sps:$4 sm:$0xff]  }
 0x1e1   : > { %1570 = vmatpush1.bf16.msra.mxu0 %v2488_v16  ;;  %2275 = vmatpush3.bf16.msra.mxu1 %v2581_v51  ;;  %v2542_v51 = vld [vmem:[%s3309_s4 + $0x160] ss:$8 sps:$4 sm:$0xff]  }
 0x1e2   : > { %1571 = vmatprep.subr.bf16.mxu0 %v2493_v17 }
 0x1e5   : > { %1572 = vmatpush1.bf16.msra.mxu0 %v2491_v18 }
 0x1e6   : > { %1573 = vmatprep.subr.bf16.mxu0 %v2496_v19 }
 0x1e9   : > { %1574 = vmatpush1.bf16.msra.mxu0 %v2494_v20 }
 0x1ea   : > { %1575 = vmatprep.subr.bf16.mxu0 %v2499_v21 }
 0x1ed   : > { %1576 = vmatpush1.bf16.msra.mxu0 %v2497_v22 }
 0x1ee   : > { %1577 = vmatprep.subr.bf16.mxu0 %v2502_v23 }
 0x1f1   : > { %1578 = vmatpush1.bf16.msra.mxu0 %v2500_v24 }
 0x1f2   : > { %1579 = vmatprep.subr.bf16.mxu0 %v2505_v25 }
 0x1f5   : > { %1580 = vmatpush1.bf16.msra.mxu0 %v2503_v26 }
 0x1f6   : > { %1581 = vmatprep.subr.bf16.mxu0 %v2508_v27 }
 0x1f9   : > { %1582 = vmatpush1.bf16.msra.mxu0 %v2506_v28 }
 0x1fa   : > { %1583 = vmatprep.subr.bf16.mxu0 %v2511_v29 }
 0x1fd   : > { %1584 = vmatpush1.bf16.msra.mxu0 %v2509_v30 }
 0x1fe   : > { %1585 = vmatprep.subr.bf16.mxu0 %v2514_v31 }
 0x201   : > { %1586 = vmatpush1.bf16.msra.mxu0 %v2512_v32 }
 0x202   : > { %1587 = vmatprep.subr.bf16.mxu0 %v2517_v33 }
 0x205   : > { %1588 = vmatpush1.bf16.msra.mxu0 %v2515_v34 }
 0x206   : > { %1589 = vmatprep.subr.bf16.mxu0 %v2520_v35  ;;  %v2524_v35 = vld [vmem:[%s3309_s4 + $0x100] ss:$8 sps:$4 sm:$0xff]  }
 0x209   : > { %1590 = vmatpush1.bf16.msra.mxu0 %v2518_v36 }
 0x20a   : > { %1591 = vmatprep.subr.bf16.mxu0 %v2523_v37  ;;  %v2529_v37 = vld [vmem:[%s3309_s4 + $0x114] ss:$8 sps:$4 sm:$0xff]  }
 0x20d   : > { %1592 = vmatpush1.bf16.msra.mxu0 %v2521_v38 }
 0x20e   : > { %1602 = vmatprep.subr.bf16.mxu0 %v2526_v39  ;;  %v2527_v39 = vld [vmem:[%s3309_s4 + $0x110] ss:$8 sps:$4 sm:$0xff]  }
 0x2a3   : > { %v1030_v10 = vpop.f32.mrb[0].mxu0  ;;  %v1071_v11 = vpop.f32.mrb[8].mxu1 }
 0x2a4   : > { %v1115_v14 = vmul.f32 %v1102_v5, %v1030_v10  ;;  %v1117_v15 = vmul.f32 %v1110_v6, %v1071_v11  ;;  %v1032_v16 = vpop.f32.mrb[1].mxu0  ;;  %v1073_v17 = vpop.f32.mrb[9].mxu1  ;;  %v2563_v5 = vld [vmem:[%s3309_s4 + $0x1d0] ss:$8 sps:$4 sm:$0xff]   ;;  %v2568_v6 = vld [vmem:[%s3309_s4 + $0x1e4] ss:$8 sps:$4 sm:$0xff]  }
 0x2a5   : > { %v1116_v18 = vmul.f32 %v1106_v7, %v1032_v16  ;;  %v1118_v19 = vmul.f32 %v1114_v53, %v1073_v17  ;;  %v1034_v20 = vpop.f32.mrb[2].mxu0  ;;  %v1075_v21 = vpop.f32.mrb[10].mxu1  ;;  %v2566_v7 = vld [vmem:[%s3309_s4 + $0x1e0] ss:$8 sps:$4 sm:$0xff]   ;;  %v2571_v53 = vld [vmem:[%s3309_s4 + $0x1f4] ss:$8 sps:$4 sm:$0xff]  }
 0x2a6   : > { %v1155_v22 = vadd.f32 %v1142_v8, %v1115_v14  ;;  %v3124_v23 = vadd.f32 %v1150_v9, %v1117_v15  ;;  %v1035_v24 = vpop.f32.mrb[3].mxu0  ;;  %v1076_v25 = vpop.f32.mrb[11].mxu1  ;;  %v2569_v9 = vld [vmem:[%s3309_s4 + $0x1f0] ss:$8 sps:$4 sm:$0xff]  }
 0x2a7   : > { %v1156_v26 = vadd.f32 %v1146_v12, %v1116_v18  ;;  %v1158_v27 = vadd.f32 %v1154_v13, %v1118_v19  ;;  %v2582_v12 = vld [vmem:[%s3310_s5 + $0x68] sm:$0xff]   ;;  %v2584_v14 = vld [vmem:[%s3310_s5 + $0x70] sm:$0xff]   ;;  %v2586_v16 = vld [vmem:[%s3310_s5 + $0x78] sm:$0xff]  }
 0x2a8   : > { %vm1159_vm7 = vcmp.gt.f32.partialorder %v1155_v22, 0.0  ;;  %v1163_v28 = vmul.f32 0.01, %v1155_v22  ;;  %v1165_v8 = vmul.f32 0.01, %v3124_v23  ;;  %vm1161_vm10 = vcmp.gt.f32.partialorder %v3124_v23, 0.0  ;;  %2276 = vmatprep.subr.bf16.mxu1 %v2582_v12 }
 0x2a9   : > { %v1164_v29 = vmul.f32 0.01, %v1156_v26  ;;  %v1166_v30 = vmul.f32 0.01, %v1158_v27  ;;  %vm1160_vm8 = vcmp.gt.f32.partialorder %v1156_v26, 0.0  ;;  %vm1162_vm9 = vcmp.gt.f32.partialorder %v1158_v27, 0.0 }
 0x2aa   : > { %v1167_v31 = vsel %vm1159_vm7, %v1155_v22, %v1163_v28  ;;  %v1169_v10 = vsel %vm1161_vm10, %v3124_v23, %v1165_v8  ;;  %v2583_v13 = vld [vmem:[%s3310_s5 + $0x28] sm:$0xff]   ;;  %v2585_v15 = vld [vmem:[%s3310_s5 + $0x30] sm:$0xff]   ;;  %v2587_v17 = vld [vmem:[%s3310_s5 + $0x38] sm:$0xff]  }
 0x2ab   : > { %v1168_v32 = vsel %vm1160_vm8, %v1156_v26, %v1164_v29  ;;  %v1170_v33 = vsel %vm1162_vm9, %v1158_v27, %v1166_v30  ;;  %v1237_v36 = vpack.c.bf16 %v1167_v31, %v1167_v31  ;;  %v1239_v11 = vpack.c.bf16 %v1169_v10, %v1169_v10  ;;  %2277 = vmatpush3.bf16.msra.mxu1 %v2583_v13  ;;  %v2171_v18 = vld [vmem:[%s2841_s24 + $0x18] sm:$0xff] }
 0x2ac   : > { %v1238_v34 = vpack.c.bf16 %v1168_v32, %v1168_v32  ;;  %v1240_v38 = vpack.c.bf16 %v1170_v33, %v1170_v33  ;;  %2278 = vmatprep.subr.bf16.mxu1 %v2584_v14  ;;  %v1647_v19 = vrot.slane %v2171_v18, %v2844_v54  ;;  %v1651_v20 = vrot.slane %v2171_v18, %v2968_v44 }
 0x2ad   : > { %v1667_v21 = vrot.slane %v2171_v18, %v2848_v56  ;;  %v1671_v22 = vrot.slane %v2171_v18, %v2971_v45 }
 0x2ae   : > { %1593 = vmatprep.mubr.bf16.mxu0 %v1238_v34  ;;  %v1657_v23 = vrot.slane %v1647_v19, %v2844_v54  ;;  %v1661_v24 = vrot.slane %v1651_v20, %v2844_v54 }
 0x2af   : > { %1594 = vmatmul.mubr.bf16.vlgmr.msra.gmra.mrb[4].mxu0 %v1237_v36  ;;  %2279 = vmatpush3.bf16.msra.mxu1 %v2585_v15  ;;  %v1677_v25 = vrot.slane %v1667_v21, %v2848_v56  ;;  %v1681_v27 = vrot.slane %v1671_v22, %v2848_v56 }
 0x2b0   : > { %1603 = vmatpush1.bf16.msra.mxu0 %v2524_v35  ;;  %1634 = vmatprep.mubr.bf16.mxu0 %v1240_v38  ;;  %v2588_v38 = vld [vmem:[%s3311_s6] sm:$0xff]  }
 0x2b1   : > { %1604 = vmatprep.subr.bf16.mxu0 %v2529_v37  ;;  %2280 = vmatprep.subr.bf16.mxu1 %v2586_v16 }
 0x2b3   : > { %2281 = vmatpush3.bf16.msra.mxu1 %v2587_v17 }
 0x2b4   : > { %1605 = vmatpush1.bf16.msra.mxu0 %v2527_v39  ;;  %2303 = vmatprep.subr.bf16.mxu1 %v2621_v1 }
 0x2b5   : > { %1606 = vmatprep.subr.bf16.mxu0 %v2532_v40  ;;  %v2589_v40 = vld [vmem:[%s3311_s6 + $0x8] sm:$0xff]  }
 0x2b8   : > { %1607 = vmatpush1.bf16.msra.mxu0 %v2530_v41  ;;  %v2590_v41 = vld [vmem:[%s3311_s6 + $0x10] sm:$0xff]  }
 0x2b9   : > { %1608 = vmatprep.subr.bf16.mxu0 %v2535_v42  ;;  %v2591_v42 = vld [vmem:[%s3311_s6 + $0x18] sm:$0xff]  }
 0x2bc   : > { %1609 = vmatpush1.bf16.msra.mxu0 %v2533_v43  ;;  %v2592_v43 = vld [vmem:[%s3311_s6 + $0x20] sm:$0xff]  }
 0x2bd   : > { %1610 = vmatprep.subr.bf16.mxu0 %v2538_v46  ;;  %v2593_v46 = vld [vmem:[%s3311_s6 + $0x28] sm:$0xff]  }
 0x2c0   : > { %1611 = vmatpush1.bf16.msra.mxu0 %v2536_v47  ;;  %v2594_v47 = vld [vmem:[%s3311_s6 + $0x30] sm:$0xff]  }
 0x2c1   : > { %1612 = vmatprep.subr.bf16.mxu0 %v2541_v48  ;;  %v2595_v48 = vld [vmem:[%s3311_s6 + $0x38] sm:$0xff]  }
 0x2c4   : > { %1613 = vmatpush1.bf16.msra.mxu0 %v2539_v49  ;;  %v2236_v49 = vld [vmem:[%s2841_s24 + $0x20] sm:$0xff] }
 0x2c5   : > { %1614 = vmatprep.subr.bf16.mxu0 %v2544_v50 }
 0x2c8   : > { %1615 = vmatpush1.bf16.msra.mxu0 %v2542_v51  ;;  %v1865_v51 = vrot.slane %v2236_v49, %v2844_v54 }
 0x2c9   : > { %1616 = vmatprep.subr.bf16.mxu0 %v2547_v52 }
 0x2cc   : > { %1617 = vmatpush1.bf16.msra.mxu0 %v2545_v55 }
 0x2cd   : > { %1618 = vmatprep.subr.bf16.mxu0 %v2550_v57  ;;  %v1870_v57 = vrot.slane %v2236_v49, %v2848_v56 }
 0x2d0   : > { %1619 = vmatpush1.bf16.msra.mxu0 %v2548_v58 }
 0x2d1   : > { %1620 = vmatprep.subr.bf16.mxu0 %v2553_v59 }
 0x2d4   : > { %1621 = vmatpush1.bf16.msra.mxu0 %v2551_v60 }
 0x2d5   : > { %1622 = vmatprep.subr.bf16.mxu0 %v2556_v61 }
 0x2d8   : > { %1623 = vmatpush1.bf16.msra.mxu0 %v2554_v62 }
 0x2d9   : > { %1624 = vmatprep.subr.bf16.mxu0 %v2559_v63 }
 0x2dc   : > { %1625 = vmatpush1.bf16.msra.mxu0 %v2557_v0  ;;  %v2253_v0 = vld [vmem:[%s2841_s24 + $0x28] sm:$0xff] }
 0x2dd   : > { %1626 = vmatprep.subr.bf16.mxu0 %v2562_v2  ;;  %v1985_v2 = vrot.slane %v2253_v0, %v2844_v54 }
 0x2e0   : > { %1627 = vmatpush1.bf16.msra.mxu0 %v2560_v3  ;;  %v1990_v3 = vrot.slane %v2253_v0, %v2848_v56 }
 0x2e1   : > { %1628 = vmatprep.subr.bf16.mxu0 %v2565_v4 }
 0x2e4   : > { %1629 = vmatpush1.bf16.msra.mxu0 %v2563_v5 }
 0x2e5   : > { %1630 = vmatprep.subr.bf16.mxu0 %v2568_v6 }
 0x2e8   : > { %1631 = vmatpush1.bf16.msra.mxu0 %v2566_v7 }
 0x2e9   : > { %1632 = vmatprep.subr.bf16.mxu0 %v2571_v53 }
 0x2ec   : > { %1633 = vmatpush1.bf16.msra.mxu0 %v2569_v9  ;;  %v2596_v9 = vld [vmem:[%s2705_s16] sm:$0xff] }
 0x2ef   : > { %1635 = vmatmul.mubr.bf16.vlgmr.msra.gmra.mrb[4].mxu0 %v1239_v11 }
 0x3c2   : > { %v1636_v26 = vpop.f32.mrb[4].mxu0 }
 0x3c3   : > { %v1662_v28 = vmul.f32 %v1657_v23, %v1636_v26  ;;  %v1638_v29 = vpop.f32.mrb[5].mxu0 }
 0x3c4   : > { %v1663_v30 = vmul.f32 %v1661_v24, %v1638_v29  ;;  %v1640_v31 = vpop.f32.mrb[6].mxu0 }
 0x3c5   : > { %v1682_v32 = vadd.f32 %v1677_v25, %v1662_v28  ;;  %v1641_v33 = vpop.f32.mrb[7].mxu0 }
 0x3c6   : > { %v1683_v44 = vadd.f32 %v1681_v27, %v1663_v30 }
 0x3c7   : > { %vm1684_vm11 = vcmp.gt.f32.partialorder %v1682_v32, 0.0  ;;  %v1686_v34 = vmul.f32 0.01, %v1682_v32 }
 0x3c8   : > { %v1687_v35 = vmul.f32 0.01, %v1683_v44  ;;  %vm1685_vm12 = vcmp.gt.f32.partialorder %v1683_v44, 0.0 }
 0x3c9   : > { %v1688_v45 = vsel %vm1684_vm11, %v1682_v32, %v1686_v34 }
 0x3ca   : > { %v1689_v36 = vsel %vm1685_vm12, %v1683_v44, %v1687_v35  ;;  %v1724_v39 = vpack.c.bf16 %v1688_v45, %v1688_v45 }
 0x3cb   : > { %v1725_v37 = vpack.c.bf16 %v1689_v36, %v1689_v36 }
 0x3cd   : > { %1854 = vmatprep.mubr.bf16.mxu1 %v1725_v37 }
 0x3ce   : > { %1855 = vmatmul.mubr.bf16.vlgmr.msra.gmra.mrb[12].mxu1 %v1724_v39 }
 0x3cf   : > { %2304 = vmatpush3.bf16.msra.mxu1 %v2588_v38  ;;  %2319 = vmatprep.mubr.msk.bf16.mxu1 %vm2623_vm2, %v2621_v1 }
 0x3d0   : > { %2305 = vmatprep.subr.bf16.mxu1 %v2621_v1 }
 0x3d3   : > { %2306 = vmatpush3.bf16.msra.mxu1 %v2589_v40 }
 0x3d4   : > { %2307 = vmatprep.subr.bf16.mxu1 %v2621_v1 }
 0x3d7   : > { %2308 = vmatpush3.bf16.msra.mxu1 %v2590_v41 }
 0x3d8   : > { %2309 = vmatprep.subr.bf16.mxu1 %v2621_v1 }
 0x3db   : > { %2310 = vmatpush3.bf16.msra.mxu1 %v2591_v42 }
 0x3dc   : > { %2311 = vmatprep.subr.bf16.mxu1 %v2621_v1 }
 0x3df   : > { %2312 = vmatpush3.bf16.msra.mxu1 %v2592_v43 }
 0x3e0   : > { %2313 = vmatprep.subr.bf16.mxu1 %v2621_v1 }
 0x3e3   : > { %2314 = vmatpush3.bf16.msra.mxu1 %v2593_v46 }
 0x3e4   : > { %2315 = vmatprep.subr.bf16.mxu1 %v2621_v1 }
 0x3e7   : > { %2316 = vmatpush3.bf16.msra.mxu1 %v2594_v47 }
 0x3e8   : > { %2317 = vmatprep.subr.bf16.mxu1 %v2621_v1 }
 0x3eb   : > { %2318 = vmatpush3.bf16.msra.mxu1 %v2595_v48 }
 0x4a1   : > { %v2282_v50 = vpop.f32.mrb[12].mxu1 }
 0x4a2   : > { %v2283_v52 = vpop.f32.mrb[13].mxu1 }
 0x4a3   : > { %v2284_v55 = vadd.f32 %v2283_v52, %v2282_v50  ;;  %v2285_v58 = vpop.f32.mrb[14].mxu1 }
 0x4a4   : > { %v2286_v59 = vpop.f32.mrb[15].mxu1 }
 0x4a5   : > { %v1866_v60 = vmul.f32 %v2284_v55, %v1865_v51 }
 0x4a7   : > { %v1871_v61 = vadd.f32 %v1870_v57, %v1866_v60 }
 0x4a9   : > { %vm1872_vm13 = vcmp.gt.f32.partialorder %v1871_v61, 0.0  ;;  %v1873_v1 = vmul.f32 0.01, %v1871_v61 }
 0x4ab   : > { %v1874_v62 = vsel %vm1872_vm13, %v1871_v61, %v1873_v1 }
 0x4ac   : > { %v1893_v63 = vpack.c.bf16 %v1874_v62, %v1874_v62 }
 0x4ae   : > { %2320 = vmatmul.mubr.bf16.vlgmr.msra.gmra.mrb[16].mxu1 %v1893_v63 }
 0x581   : > { %v1976_v4 = vpop.f32.mrb[16].mxu1 }
 0x582   : > { %v1986_v5 = vmul.f32 %v1985_v2, %v1976_v4  ;;  %v2321_v6 = vpop.f32.mrb[17].mxu1 }
 0x583   : > { %v1979_v7 = vpop.f32.mrb[18].mxu1 }
 0x584   : > { %v1991_v53 = vadd.f32 %v1990_v3, %v1986_v5  ;;  %v2322_v8 = vpop.f32.mrb[19].mxu1 }
 0x586   : > { %v1992_v10 = vadd.f32 %v2596_v9, %v1991_v53 }
 0x588   : > { %1993 = vst.msk [vmem:[%s351_s21] sm:$0xff] %vm357_vm3, %v1992_v10 }
 0x589 PF: > { %s18_s29 = sadd.s32 1, %s2619_s29   ;;  %s3314_s27 = smov %s2615_s28 }
 0x58a   : > { %p15_p5 = scmp.ge.s32.totalorder %s18_s29, 4   ;;  %s3315_s28 = smov %s3317_s30 }
 0x58c   :  { %17 = sbr.rel (!%p15_p5) target bundleno = 2 (0x2), region = 90 }

</bundles_post_ra>
